<compile_context>
chip_gen: v5e
topology: v5e:2x2
jax: 0.10.0
libtpu: 0.0.40
codegen_flags: <defaults>
</compile_context>

<pallas_src>
import functools

import jax
import jax.numpy as jnp
from jax import lax
from jax.experimental import pallas as pl
from jax.experimental.pallas import tpu as pltpu

MATMUL_DTYPE = jnp.bfloat16   # MXU operand dtype (f32 accumulation everywhere)
APPROX_RECIPROCAL = True      # EUP approximate reciprocal in softmax (set False for exact ref)

# TODO(synk): optionally try pipeline_mode=pl.Buffered(3) on the weight BlockSpecs if a
#             profile shows exposed DMA at tile boundaries.
# TODO(synk): optional v7x-only fp8 weight path (bf16 x fp8 MXU) to halve weight traffic.


@functools.lru_cache(maxsize=None)
def _tpu_config():
    """Per-generation scoped-VMEM budget and tile sizes (re-derived per chip class)."""
    cap = 64 * 1024 * 1024            # conservative default = v7x-class VMEM per core
    try:
        info = pltpu.get_tpu_info()
        for name in ("vmem_capacity_bytes", "vmem_size_bytes", "vmem_bytes"):
            v = getattr(info, name, None)
            if v:
                cap = int(v)
                break
    except Exception:
        pass
    if cap >= 96 * 1024 * 1024:
        # v5e / v6e class: 128 MiB VMEM per TensorCore -> large tiles, high scoped limit.
        return {"vmem_limit": 100 * 1024 * 1024, "ln_n_tile": 2048,
                "res_n_tile": 1024, "k_tile": 4096}
    # v7x class: 64 MiB per core -> leave headroom for double buffers + Mosaic scratch.
    return {"vmem_limit": 52 * 1024 * 1024, "ln_n_tile": 1024,
            "res_n_tile": 512, "k_tile": 4096}


def _pick_tile(dim, cap):
    """Largest usable tile <= cap that divides dim (prefer lane-aligned multiples of 128).
    Never silently materializes the full panel when dim > cap."""
    if dim <= cap:
        return dim
    start = cap - cap % 128
    for t in range(start, 0, -128):           # lane-aligned candidates first
        if t and dim % t == 0:
            return t
    for t in range(cap, 0, -1):               # fallback: any divisor
        if dim % t == 0:
            return t
    return dim


def _layernorm(x, gamma, beta, eps=1e-6):
    mu = jnp.mean(x, axis=-1, keepdims=True)
    var = jnp.mean((x - mu) ** 2, axis=-1, keepdims=True)
    return (x - mu) * lax.rsqrt(var + eps) * gamma + beta


def _silu(x):
    return x * jax.nn.sigmoid(x)


# ---------------------------------------------------------------------------
# Kernel 1: out = act( LayerNorm(x) @ W + bias )   -- grid (N_tiles,), rows = B*L
# ---------------------------------------------------------------------------
def _ln_gemm_kernel(x_ref, g_ref, bt_ref, w_ref, bias_ref, out_ref, nx_ref, *, act):
    # LayerNorm + f32->bf16 cast computed once (first grid step) into a VMEM scratch and
    # reused for every N tile (the x block is resident across the whole grid).
    @pl.when(pl.program_id(0) == 0)
    def _():
        nx_ref[...] = _layernorm(x_ref[...], g_ref[...], bt_ref[...]).astype(nx_ref.dtype)

    y = jnp.dot(nx_ref[...], w_ref[...],
                preferred_element_type=jnp.float32) + bias_ref[...]      # (R, tn) f32
    if act == "silu":
        y = _silu(y)
    out_ref[...] = y.astype(out_ref.dtype)


def ln_gemm(x2, gamma, beta, w, bias, *, act, out_dtype, cfg):
    R, H = x2.shape
    _, N = w.shape
    tn = _pick_tile(N, cfg["ln_n_tile"])
    kernel = functools.partial(_ln_gemm_kernel, act=act)
    return pl.pallas_call(
        kernel,
        out_shape=jax.ShapeDtypeStruct((R, N), out_dtype),
        grid=(N // tn,),
        in_specs=[
            pl.BlockSpec((R, H), lambda n: (0, 0)),     # x resident (batch folded in rows)
            pl.BlockSpec((1, H), lambda n: (0, 0)),     # gamma
            pl.BlockSpec((1, H), lambda n: (0, 0)),     # beta
            pl.BlockSpec((H, tn), lambda n: (0, n)),    # streamed weight panel
            pl.BlockSpec((1, tn), lambda n: (0, n)),    # bias tile
        ],
        out_specs=pl.BlockSpec((R, tn), lambda n: (0, n)),
        scratch_shapes=[pltpu.VMEM((R, H), MATMUL_DTYPE)],   # cached LayerNorm(x) in bf16
        compiler_params=pltpu.CompilerParams(
            # "arbitrary": scratch init at n==0 needs the whole grid on one core; the
            # kernel is weight-DMA-bound so megacore sharding would not help anyway.
            dimension_semantics=("arbitrary",),
            vmem_limit_bytes=cfg["vmem_limit"]),
    )(x2, gamma, beta, w, bias)


# ---------------------------------------------------------------------------
# Kernel 2: multi-head attention with in-kernel mask bias  -- grid (B, head_groups)
# ---------------------------------------------------------------------------
def _mha_kernel(mrow_ref, mcol_ref, q_ref, k_ref, v_ref, out_ref,
                *, nheads, d, q_off, k_off, v_off):
    # Additive bias from the (L,) validity mask, built on the VPU (never DMA'd):
    # position (i, j) is unmasked iff token i OR token j is valid, matching the PyTorch
    # m + m.transpose(2, 3) construction (boolean add == OR).
    # NOTE: no explicit NaN-guard is needed; with max-subtraction an all-invalid row
    # degenerates to a finite uniform softmax (outputs for fully-padded sequences differ
    # from the PyTorch reference but are discarded anyway).
    row = mrow_ref[0]                                    # (1, L) f32, 1.0 = valid
    col = mcol_ref[0]                                    # (L, 1) f32 (tiny per-batch DMA)
    bias = jnp.where((row + col) > 0.0, 0.0, -1e9).astype(jnp.float32)   # (L, L)

    for h in range(nheads):                              # static loop over heads in block
        q = q_ref[0, :, q_off + h * d:q_off + (h + 1) * d]      # (L, d); 1/sqrt(d) folded
        k = k_ref[0, :, k_off + h * d:k_off + (h + 1) * d]
        v = v_ref[0, :, v_off + h * d:v_off + (h + 1) * d]

        # q . k^T without an explicit transpose: contract the last dims of both operands.
        s = lax.dot_general(q, k, (((1,), (1,)), ((), ())),
                            preferred_element_type=jnp.float32) + bias   # (L, L) f32
        s = s - jnp.max(s, axis=-1, keepdims=True)
        p = jnp.exp(s)
        denom = jnp.sum(p, axis=-1, keepdims=True)
        if APPROX_RECIPROCAL:
            p = p * pl.reciprocal(denom, approx=True)
        else:
            p = p / denom
        o = jnp.dot(p.astype(v.dtype), v, preferred_element_type=jnp.float32)  # (L, d)
        out_ref[0, :, h * d:(h + 1) * d] = o.astype(out_ref.dtype)   # slice write, no concat


def _pick_head_group(heads, d):
    """Smallest head-group size G >= 4 (else any) with lane-aligned G*d; None -> fallback."""
    divisors = [g for g in range(1, heads + 1) if heads % g == 0]
    for g in divisors:
        if g >= 4 and (g * d) % 128 == 0:
            return g
    for g in divisors:
        if (g * d) % 128 == 0:
            return g
    return None


def mha(mask_row, mask_col, qkv, heads, *, cfg):
    B, L, H3 = qkv.shape
    H = H3 // 3
    d = H // heads
    g = _pick_head_group(heads, d)

    if g is not None:
        # Head-group grid: (B, heads//G), both parallel (gives v7x's 2nd core work at B=1).
        n_groups = heads // g
        gd = g * d
        kernel = functools.partial(_mha_kernel, nheads=g, d=d, q_off=0, k_off=0, v_off=0)
        in_specs = [
            pl.BlockSpec((1, 1, L), lambda b, hg: (b, 0, 0)),
            pl.BlockSpec((1, L, 1), lambda b, hg: (b, 0, 0)),
            pl.BlockSpec((1, L, gd), lambda b, hg: (b, 0, hg)),                   # q slice
            pl.BlockSpec((1, L, gd), lambda b, hg: (b, 0, hg + n_groups)),        # k slice
            pl.BlockSpec((1, L, gd), lambda b, hg: (b, 0, hg + 2 * n_groups)),    # v slice
        ]
        out_spec = pl.BlockSpec((1, L, gd), lambda b, hg: (b, 0, hg))
    else:
        # Small / unaligned head_dim fallback (toy shapes): one whole (L, 3H) block,
        # heads unrolled.  qkv is simply passed three times with identical specs.
        n_groups = 1
        kernel = functools.partial(_mha_kernel, nheads=heads, d=d,
                                   q_off=0, k_off=H, v_off=2 * H)
        full = pl.BlockSpec((1, L, H3), lambda b, hg: (b, 0, 0))
        in_specs = [
            pl.BlockSpec((1, 1, L), lambda b, hg: (b, 0, 0)),
            pl.BlockSpec((1, L, 1), lambda b, hg: (b, 0, 0)),
            full, full, full,
        ]
        out_spec = pl.BlockSpec((1, L, H), lambda b, hg: (b, 0, 0))

    return pl.pallas_call(
        kernel,
        out_shape=jax.ShapeDtypeStruct((B, L, H), qkv.dtype),
        grid=(B, n_groups),
        in_specs=in_specs,
        out_specs=out_spec,
        compiler_params=pltpu.CompilerParams(
            dimension_semantics=("parallel", "parallel"),
            vmem_limit_bytes=cfg["vmem_limit"]),
    )(mask_row, mask_col, qkv, qkv, qkv)


# ---------------------------------------------------------------------------
# Kernel 3: out = res + (a @ W + bias) * mod   -- grid (N_tiles, K_tiles), rows = B*L
#   * activations full-K resident; only the weight is K-tiled (streamed once total)
#   * f32 accumulator scratch; residual updated in place via input_output_aliases
# ---------------------------------------------------------------------------
def _gemm_residual_kernel(a_ref, w_ref, bias_ref, res_ref, mod_ref, out_ref, acc_ref,
                          *, batch, rows_per_batch, tk):
    k = pl.program_id(1)

    @pl.when(k == 0)
    def _():
        acc_ref[...] = jnp.zeros_like(acc_ref)

    if tk == a_ref.shape[1]:                       # single K step: no dynamic slice needed
        a = a_ref[...]
    else:
        start = pl.multiple_of(k * tk, tk)
        a = a_ref[:, pl.ds(start, tk)]             # slice of the resident activations
    acc_ref[...] += jnp.dot(a, w_ref[...], preferred_element_type=jnp.float32)   # (R, tn)

    @pl.when(k == pl.num_programs(1) - 1)
    def _():
        y = acc_ref[...] + bias_ref[...]
        # Per-batch adaLN gate: rows are laid out [batch0 | batch1 | ...], batch is static.
        for b in range(batch):
            rs = slice(b * rows_per_batch, (b + 1) * rows_per_batch)
            out_ref[rs, :] = (res_ref[rs, :] + y[rs, :] * mod_ref[b:b + 1, :]
                              ).astype(out_ref.dtype)


def gemm_residual(a, w, bias, res, mod, *, batch, cfg):
    R, K = a.shape
    _, N = w.shape
    tn = _pick_tile(N, cfg["res_n_tile"])
    tk = _pick_tile(K, cfg["k_tile"])
    rows_per_batch = R // batch
    kernel = functools.partial(_gemm_residual_kernel, batch=batch,
                               rows_per_batch=rows_per_batch, tk=tk)
    return pl.pallas_call(
        kernel,
        out_shape=jax.ShapeDtypeStruct((R, N), res.dtype),
        grid=(N // tn, K // tk),                                # reduction axis last
        in_specs=[
            pl.BlockSpec((R, K), lambda n, k: (0, 0)),          # activations: full-K resident
            pl.BlockSpec((tk, tn), lambda n, k: (k, n)),        # streamed weight tile
            pl.BlockSpec((1, tn), lambda n, k: (0, n)),         # bias tile
            pl.BlockSpec((R, tn), lambda n, k: (0, n)),         # residual (aliased w/ output)
            pl.BlockSpec((batch, tn), lambda n, k: (0, n)),     # adaLN gate, 1 row per batch
        ],
        out_specs=pl.BlockSpec((R, tn), lambda n, k: (0, n)),
        scratch_shapes=[pltpu.VMEM((R, tn), jnp.float32)],
        input_output_aliases={3: 0},                            # in-place residual update
        compiler_params=pltpu.CompilerParams(
            dimension_semantics=("parallel", "arbitrary"),
            vmem_limit_bytes=cfg["vmem_limit"]),
    )(a, w, bias, res, mod)


# ---------------------------------------------------------------------------
# TokenRefinerBlock / IndividualTokenRefiner glue
# ---------------------------------------------------------------------------
def token_refiner_block(x2, c, mask_row, mask_col, p, heads, batch, seq, cfg):
    H = x2.shape[-1]

    # adaLN modulation hoisted out of the Pallas kernels: tiny (B,H)x(H,2H) GEMM that does
    # not depend on x.
    mod = _silu(c) @ p["w_ada"] + p["b_ada"]                   # (B, 2H) f32
    mod1 = mod[:, :H]                                          # (B, H)
    mod2 = mod[:, H:]

    # norm1 -> fused QKV projection (1/sqrt(d) pre-folded into the q slice of W/b).
    qkv = ln_gemm(x2, p["g1"], p["bt1"], p["w_qkv"], p["b_qkv"],
                  act=None, out_dtype=p["w_qkv"].dtype, cfg=cfg)      # (B*L, 3H) bf16
    # multi-head attention with in-kernel mask bias.
    attn = mha(mask_row, mask_col, qkv.reshape(batch, seq, 3 * H), heads, cfg=cfg)
    # x = x + proj(attn) * mod1
    x2 = gemm_residual(attn.reshape(batch * seq, H), p["w_proj"], p["b_proj"],
                       x2, mod1, batch=batch, cfg=cfg)
    # x = x + mlp(norm2(x)) * mod2,  mlp = Linear -> SiLU -> Linear
    h = ln_gemm(x2, p["g2"], p["bt2"], p["w_mlp1"], p["b_mlp1"],
                act="silu", out_dtype=p["w_mlp1"].dtype, cfg=cfg)     # (B*L, 4H) bf16
    x2 = gemm_residual(h, p["w_mlp2"], p["b_mlp2"], x2, mod2, batch=batch, cfg=cfg)
    return x2


def individual_token_refiner(x, c, maskf, params_list, heads):
    """Forward pass of IndividualTokenRefiner.

    x: (B, L, H) f32, c: (B, H) f32, maskf: (B, L) f32 validity mask (1.0 = valid).
    params_list: list of prepared block params (see prepare_block_params).
    """
    B, L, H = x.shape
    cfg = _tpu_config()
    mask_row = maskf.reshape(B, 1, L)
    mask_col = maskf.reshape(B, L, 1)
    x2 = x.reshape(B * L, H)                 # fold batch into rows: weights streamed once
    for p in params_list:
        x2 = token_refiner_block(x2, c, mask_row, mask_col, p, heads, B, L, cfg)
    return x2.reshape(B, L, H)


# ---------------------------------------------------------------------------
# Parameters
# ---------------------------------------------------------------------------
def init_block_params(key, hidden):
    """Deterministic synthetic f32 parameters for one TokenRefinerBlock.
    Linear weights are (in_features, out_features) -- transposed vs. PyTorch."""
    ks = jax.random.split(key, 8)
    s = 0.02
    return dict(
        w_ada=jax.random.normal(ks[0], (hidden, 2 * hidden), jnp.float32) * s,
        b_ada=jnp.zeros((1, 2 * hidden), jnp.float32),
        g1=jnp.ones((1, hidden), jnp.float32),
        bt1=jnp.zeros((1, hidden), jnp.float32),
        w_qkv=jax.random.normal(ks[1], (hidden, 3 * hidden), jnp.float32) * s,
        b_qkv=jax.random.normal(ks[2], (1, 3 * hidden), jnp.float32) * s,
        w_proj=jax.random.normal(ks[3], (hidden, hidden), jnp.float32) * s,
        b_proj=jax.random.normal(ks[4], (1, hidden), jnp.float32) * s,
        g2=jnp.ones((1, hidden), jnp.float32),
        bt2=jnp.zeros((1, hidden), jnp.float32),
        w_mlp1=jax.random.normal(ks[5], (hidden, 4 * hidden), jnp.float32) * s,
        b_mlp1=jax.random.normal(ks[6], (1, 4 * hidden), jnp.float32) * s,
        w_mlp2=jax.random.normal(ks[7], (4 * hidden, hidden), jnp.float32) * s,
        b_mlp2=jnp.zeros((1, hidden), jnp.float32),
    )


def prepare_block_params(p, heads, matmul_dtype=MATMUL_DTYPE):
    """One-off prep: fold 1/sqrt(d) into the q slice of the qkv projection and cast the
    large GEMM weights to the MXU operand dtype (bf16). Biases / LN params / adaLN stay
    f32 (VPU math). Folding adds a tiny extra quantization of the scaled q weights."""
    H = p["g1"].shape[-1]
    d = H // heads
    scale = 1.0 / (d ** 0.5)
    w_qkv = p["w_qkv"].at[:, :H].multiply(scale)
    b_qkv = p["b_qkv"].at[:, :H].multiply(scale)
    return dict(
        w_ada=p["w_ada"].astype(jnp.float32),
        b_ada=p["b_ada"].astype(jnp.float32),
        g1=p["g1"].astype(jnp.float32), bt1=p["bt1"].astype(jnp.float32),
        g2=p["g2"].astype(jnp.float32), bt2=p["bt2"].astype(jnp.float32),
        w_qkv=w_qkv.astype(matmul_dtype), b_qkv=b_qkv.astype(jnp.float32),
        w_proj=p["w_proj"].astype(matmul_dtype), b_proj=p["b_proj"].astype(jnp.float32),
        w_mlp1=p["w_mlp1"].astype(matmul_dtype), b_mlp1=p["b_mlp1"].astype(jnp.float32),
        w_mlp2=p["w_mlp2"].astype(matmul_dtype), b_mlp2=p["b_mlp2"].astype(jnp.float32),
    )


if __name__ == "__main__":
    B, L, H, heads, num_blocks = 2, 8, 32, 4, 2

    key = jax.random.PRNGKey(0)
    kx, kc, kp = jax.random.split(key, 3)
    x = jax.random.normal(kx, (B, L, H), jnp.float32)
    c = jax.random.normal(kc, (B, H), jnp.float32)
    mask = jnp.array([[True] * 6 + [False] * 2,
                      [True] * 4 + [False] * 4])               # (B, L) validity mask

    raw_params = [init_block_params(k, H) for k in jax.random.split(kp, num_blocks)]
    params = [prepare_block_params(p, heads) for p in raw_params]
    maskf = mask.astype(jnp.float32)                           # 1.0 = valid token

    fwd = jax.jit(functools.partial(individual_token_refiner, heads=heads))
    out = jax.block_until_ready(fwd(x, c, maskf, params))

    assert out.shape == (B, L, H)
    assert out.dtype == jnp.float32
    assert bool(jnp.all(jnp.isfinite(out)))
    print("KERNEL_OK")
</pallas_src>

<mosaic_0001>
module attributes {stable_mosaic.version = 11 : i64} {
  func.func @_mha_kernel(%arg0: i32, %arg1: i32, %arg2: memref<1x1x8xf32, #tpu.memory_space<vmem>>, %arg3: memref<1x8x1xf32, #tpu.memory_space<vmem>>, %arg4: memref<1x8x96xbf16, #tpu.memory_space<vmem>>, %arg5: memref<1x8x96xbf16, #tpu.memory_space<vmem>>, %arg6: memref<1x8x96xbf16, #tpu.memory_space<vmem>>, %arg7: memref<1x8x32xbf16, #tpu.memory_space<vmem>>) attributes {dimension_semantics = [#tpu.dimension_semantics<parallel>, #tpu.dimension_semantics<parallel>], iteration_bounds = array<i64: 2, 1>, scalar_prefetch = 0 : i64, scratch_operands = 0 : i64, tpu.core_type = #tpu.core_type<tc>, window_params = [{transform_indices = @transform_0, window_bounds = array<i64: 1, 1, 8>}, {transform_indices = @transform_1, window_bounds = array<i64: 1, 8, 1>}, {transform_indices = @transform_2, window_bounds = array<i64: 1, 8, 96>}, {transform_indices = @transform_3, window_bounds = array<i64: 1, 8, 96>}, {transform_indices = @transform_4, window_bounds = array<i64: 1, 8, 96>}, {transform_indices = @transform_5, window_bounds = array<i64: 1, 8, 32>}]} {
    %c0 = arith.constant 0 : index
    %c0_0 = arith.constant 0 : index
    %c0_1 = arith.constant 0 : index
    %0 = vector.load %arg2[%c0, %c0_0, %c0_1] : memref<1x1x8xf32, #tpu.memory_space<vmem>>, vector<1x1x8xf32>
    %1 = vector.shape_cast %0 : vector<1x1x8xf32> to vector<1x8xf32>
    %c0_2 = arith.constant 0 : index
    %c0_3 = arith.constant 0 : index
    %c0_4 = arith.constant 0 : index
    %2 = vector.load %arg3[%c0_2, %c0_3, %c0_4] : memref<1x8x1xf32, #tpu.memory_space<vmem>>, vector<1x8x1xf32>
    %3 = vector.shape_cast %2 : vector<1x8x1xf32> to vector<8x1xf32>
    %4 = vector.broadcast %1 : vector<1x8xf32> to vector<8x8xf32>
    %5 = vector.broadcast %3 : vector<8x1xf32> to vector<8x8xf32>
    %6 = arith.addf %4, %5 : vector<8x8xf32>
    %cst = arith.constant 0.000000e+00 : f32
    %7 = vector.broadcast %cst : f32 to vector<8x8xf32>
    %8 = arith.cmpf ogt, %6, %7 : vector<8x8xf32>
    %cst_5 = arith.constant 0.000000e+00 : f32
    %cst_6 = arith.constant -1.000000e+09 : f32
    %9 = vector.broadcast %cst_5 : f32 to vector<8x8xf32>
    %10 = vector.broadcast %cst_6 : f32 to vector<8x8xf32>
    %11 = arith.select %8, %9, %10 : vector<8x8xi1>, vector<8x8xf32>
    %c0_7 = arith.constant 0 : index
    %c0_8 = arith.constant 0 : index
    %c0_9 = arith.constant 0 : index
    %12 = vector.load %arg4[%c0_7, %c0_8, %c0_9] : memref<1x8x96xbf16, #tpu.memory_space<vmem>>, vector<1x8x8xbf16>
    %13 = vector.shape_cast %12 : vector<1x8x8xbf16> to vector<8x8xbf16>
    %c0_10 = arith.constant 0 : index
    %c0_11 = arith.constant 0 : index
    %c32 = arith.constant 32 : index
    %14 = vector.load %arg5[%c0_10, %c0_11, %c32] : memref<1x8x96xbf16, #tpu.memory_space<vmem>>, vector<1x8x8xbf16>
    %15 = vector.shape_cast %14 : vector<1x8x8xbf16> to vector<8x8xbf16>
    %c0_12 = arith.constant 0 : index
    %c0_13 = arith.constant 0 : index
    %c64 = arith.constant 64 : index
    %16 = vector.load %arg6[%c0_12, %c0_13, %c64] : memref<1x8x96xbf16, #tpu.memory_space<vmem>>, vector<1x8x8xbf16>
    %17 = vector.shape_cast %16 : vector<1x8x8xbf16> to vector<8x8xbf16>
    %cst_14 = arith.constant dense<0.000000e+00> : vector<8x8xf32>
    %18 = tpu.matmul %13, %15, %cst_14 {dimension_numbers = #tpu.dot_dimension_numbers<[1], [1], [0], [0], [0, 0, 1, 0], [], []>} : vector<8x8xbf16>, vector<8x8xbf16>, vector<8x8xf32> -> vector<8x8xf32>
    %19 = arith.addf %18, %11 : vector<8x8xf32>
    %cst_15 = arith.constant dense<0xFF800000> : vector<8xf32>
    %20 = vector.multi_reduction <maximumf>, %19, %cst_15 [1] : vector<8x8xf32> to vector<8xf32>
    %21 = vector.shape_cast %20 : vector<8xf32> to vector<8x1xf32>
    %22 = vector.broadcast %21 : vector<8x1xf32> to vector<8x8xf32>
    %23 = arith.subf %19, %22 : vector<8x8xf32>
    %24 = math.exp %23 : vector<8x8xf32>
    %cst_16 = arith.constant dense<0.000000e+00> : vector<8xf32>
    %25 = vector.multi_reduction <add>, %24, %cst_16 [1] : vector<8x8xf32> to vector<8xf32>
    %26 = vector.shape_cast %25 : vector<8xf32> to vector<8x1xf32>
    %27 = tpu.reciprocal %26 {approx = true} : vector<8x1xf32> -> vector<8x1xf32>
    %28 = vector.broadcast %27 : vector<8x1xf32> to vector<8x8xf32>
    %29 = arith.mulf %24, %28 : vector<8x8xf32>
    %30 = arith.truncf %29 : vector<8x8xf32> to vector<8x8xbf16>
    %cst_17 = arith.constant dense<0.000000e+00> : vector<8x8xf32>
    %31 = tpu.matmul %30, %17, %cst_17 {dimension_numbers = #tpu.dot_dimension_numbers<[1], [0], [0], [1], [0, 0, 1, 1], [], []>} : vector<8x8xbf16>, vector<8x8xbf16>, vector<8x8xf32> -> vector<8x8xf32>
    %32 = arith.truncf %31 : vector<8x8xf32> to vector<8x8xbf16>
    %c0_18 = arith.constant 0 : index
    %c0_19 = arith.constant 0 : index
    %c0_20 = arith.constant 0 : index
    %33 = vector.load %arg7[%c0_18, %c0_19, %c0_20] : memref<1x8x32xbf16, #tpu.memory_space<vmem>>, vector<1x8x8xbf16>
    %34 = vector.shape_cast %33 : vector<1x8x8xbf16> to vector<8x8xbf16>
    %35 = vector.shape_cast %32 : vector<8x8xbf16> to vector<1x8x8xbf16>
    tpu.vector_store %arg7[%c0_18, %c0_19, %c0_20], %35 {strides = array<i32>} : memref<1x8x32xbf16, #tpu.memory_space<vmem>>, vector<1x8x8xbf16>,
    %c0_21 = arith.constant 0 : index
    %c0_22 = arith.constant 0 : index
    %c8 = arith.constant 8 : index
    %36 = vector.load %arg4[%c0_21, %c0_22, %c8] : memref<1x8x96xbf16, #tpu.memory_space<vmem>>, vector<1x8x8xbf16>
    %37 = vector.shape_cast %36 : vector<1x8x8xbf16> to vector<8x8xbf16>
    %c0_23 = arith.constant 0 : index
    %c0_24 = arith.constant 0 : index
    %c40 = arith.constant 40 : index
    %38 = vector.load %arg5[%c0_23, %c0_24, %c40] : memref<1x8x96xbf16, #tpu.memory_space<vmem>>, vector<1x8x8xbf16>
    %39 = vector.shape_cast %38 : vector<1x8x8xbf16> to vector<8x8xbf16>
    %c0_25 = arith.constant 0 : index
    %c0_26 = arith.constant 0 : index
    %c72 = arith.constant 72 : index
    %40 = vector.load %arg6[%c0_25, %c0_26, %c72] : memref<1x8x96xbf16, #tpu.memory_space<vmem>>, vector<1x8x8xbf16>
    %41 = vector.shape_cast %40 : vector<1x8x8xbf16> to vector<8x8xbf16>
    %cst_27 = arith.constant dense<0.000000e+00> : vector<8x8xf32>
    %42 = tpu.matmul %37, %39, %cst_27 {dimension_numbers = #tpu.dot_dimension_numbers<[1], [1], [0], [0], [0, 0, 1, 0], [], []>} : vector<8x8xbf16>, vector<8x8xbf16>, vector<8x8xf32> -> vector<8x8xf32>
    %43 = arith.addf %42, %11 : vector<8x8xf32>
    %cst_28 = arith.constant dense<0xFF800000> : vector<8xf32>
    %44 = vector.multi_reduction <maximumf>, %43, %cst_28 [1] : vector<8x8xf32> to vector<8xf32>
    %45 = vector.shape_cast %44 : vector<8xf32> to vector<8x1xf32>
    %46 = vector.broadcast %45 : vector<8x1xf32> to vector<8x8xf32>
    %47 = arith.subf %43, %46 : vector<8x8xf32>
    %48 = math.exp %47 : vector<8x8xf32>
    %cst_29 = arith.constant dense<0.000000e+00> : vector<8xf32>
    %49 = vector.multi_reduction <add>, %48, %cst_29 [1] : vector<8x8xf32> to vector<8xf32>
    %50 = vector.shape_cast %49 : vector<8xf32> to vector<8x1xf32>
    %51 = tpu.reciprocal %50 {approx = true} : vector<8x1xf32> -> vector<8x1xf32>
    %52 = vector.broadcast %51 : vector<8x1xf32> to vector<8x8xf32>
    %53 = arith.mulf %48, %52 : vector<8x8xf32>
    %54 = arith.truncf %53 : vector<8x8xf32> to vector<8x8xbf16>
    %cst_30 = arith.constant dense<0.000000e+00> : vector<8x8xf32>
    %55 = tpu.matmul %54, %41, %cst_30 {dimension_numbers = #tpu.dot_dimension_numbers<[1], [0], [0], [1], [0, 0, 1, 1], [], []>} : vector<8x8xbf16>, vector<8x8xbf16>, vector<8x8xf32> -> vector<8x8xf32>
    %56 = arith.truncf %55 : vector<8x8xf32> to vector<8x8xbf16>
    %c0_31 = arith.constant 0 : index
    %c0_32 = arith.constant 0 : index
    %c8_33 = arith.constant 8 : index
    %57 = vector.load %arg7[%c0_31, %c0_32, %c8_33] : memref<1x8x32xbf16, #tpu.memory_space<vmem>>, vector<1x8x8xbf16>
    %58 = vector.shape_cast %57 : vector<1x8x8xbf16> to vector<8x8xbf16>
    %59 = vector.shape_cast %56 : vector<8x8xbf16> to vector<1x8x8xbf16>
    tpu.vector_store %arg7[%c0_31, %c0_32, %c8_33], %59 {strides = array<i32>} : memref<1x8x32xbf16, #tpu.memory_space<vmem>>, vector<1x8x8xbf16>,
    %c0_34 = arith.constant 0 : index
    %c0_35 = arith.constant 0 : index
    %c16 = arith.constant 16 : index
    %60 = vector.load %arg4[%c0_34, %c0_35, %c16] : memref<1x8x96xbf16, #tpu.memory_space<vmem>>, vector<1x8x8xbf16>
    %61 = vector.shape_cast %60 : vector<1x8x8xbf16> to vector<8x8xbf16>
    %c0_36 = arith.constant 0 : index
    %c0_37 = arith.constant 0 : index
    %c48 = arith.constant 48 : index
    %62 = vector.load %arg5[%c0_36, %c0_37, %c48] : memref<1x8x96xbf16, #tpu.memory_space<vmem>>, vector<1x8x8xbf16>
    %63 = vector.shape_cast %62 : vector<1x8x8xbf16> to vector<8x8xbf16>
    %c0_38 = arith.constant 0 : index
    %c0_39 = arith.constant 0 : index
    %c80 = arith.constant 80 : index
    %64 = vector.load %arg6[%c0_38, %c0_39, %c80] : memref<1x8x96xbf16, #tpu.memory_space<vmem>>, vector<1x8x8xbf16>
    %65 = vector.shape_cast %64 : vector<1x8x8xbf16> to vector<8x8xbf16>
    %cst_40 = arith.constant dense<0.000000e+00> : vector<8x8xf32>
    %66 = tpu.matmul %61, %63, %cst_40 {dimension_numbers = #tpu.dot_dimension_numbers<[1], [1], [0], [0], [0, 0, 1, 0], [], []>} : vector<8x8xbf16>, vector<8x8xbf16>, vector<8x8xf32> -> vector<8x8xf32>
    %67 = arith.addf %66, %11 : vector<8x8xf32>
    %cst_41 = arith.constant dense<0xFF800000> : vector<8xf32>
    %68 = vector.multi_reduction <maximumf>, %67, %cst_41 [1] : vector<8x8xf32> to vector<8xf32>
    %69 = vector.shape_cast %68 : vector<8xf32> to vector<8x1xf32>
    %70 = vector.broadcast %69 : vector<8x1xf32> to vector<8x8xf32>
    %71 = arith.subf %67, %70 : vector<8x8xf32>
    %72 = math.exp %71 : vector<8x8xf32>
    %cst_42 = arith.constant dense<0.000000e+00> : vector<8xf32>
    %73 = vector.multi_reduction <add>, %72, %cst_42 [1] : vector<8x8xf32> to vector<8xf32>
    %74 = vector.shape_cast %73 : vector<8xf32> to vector<8x1xf32>
    %75 = tpu.reciprocal %74 {approx = true} : vector<8x1xf32> -> vector<8x1xf32>
    %76 = vector.broadcast %75 : vector<8x1xf32> to vector<8x8xf32>
    %77 = arith.mulf %72, %76 : vector<8x8xf32>
    %78 = arith.truncf %77 : vector<8x8xf32> to vector<8x8xbf16>
    %cst_43 = arith.constant dense<0.000000e+00> : vector<8x8xf32>
    %79 = tpu.matmul %78, %65, %cst_43 {dimension_numbers = #tpu.dot_dimension_numbers<[1], [0], [0], [1], [0, 0, 1, 1], [], []>} : vector<8x8xbf16>, vector<8x8xbf16>, vector<8x8xf32> -> vector<8x8xf32>
    %80 = arith.truncf %79 : vector<8x8xf32> to vector<8x8xbf16>
    %c0_44 = arith.constant 0 : index
    %c0_45 = arith.constant 0 : index
    %c16_46 = arith.constant 16 : index
    %81 = vector.load %arg7[%c0_44, %c0_45, %c16_46] : memref<1x8x32xbf16, #tpu.memory_space<vmem>>, vector<1x8x8xbf16>
    %82 = vector.shape_cast %81 : vector<1x8x8xbf16> to vector<8x8xbf16>
    %83 = vector.shape_cast %80 : vector<8x8xbf16> to vector<1x8x8xbf16>
    tpu.vector_store %arg7[%c0_44, %c0_45, %c16_46], %83 {strides = array<i32>} : memref<1x8x32xbf16, #tpu.memory_space<vmem>>, vector<1x8x8xbf16>,
    %c0_47 = arith.constant 0 : index
    %c0_48 = arith.constant 0 : index
    %c24 = arith.constant 24 : index
    %84 = vector.load %arg4[%c0_47, %c0_48, %c24] : memref<1x8x96xbf16, #tpu.memory_space<vmem>>, vector<1x8x8xbf16>
    %85 = vector.shape_cast %84 : vector<1x8x8xbf16> to vector<8x8xbf16>
    %c0_49 = arith.constant 0 : index
    %c0_50 = arith.constant 0 : index
    %c56 = arith.constant 56 : index
    %86 = vector.load %arg5[%c0_49, %c0_50, %c56] : memref<1x8x96xbf16, #tpu.memory_space<vmem>>, vector<1x8x8xbf16>
    %87 = vector.shape_cast %86 : vector<1x8x8xbf16> to vector<8x8xbf16>
    %c0_51 = arith.constant 0 : index
    %c0_52 = arith.constant 0 : index
    %c88 = arith.constant 88 : index
    %88 = vector.load %arg6[%c0_51, %c0_52, %c88] : memref<1x8x96xbf16, #tpu.memory_space<vmem>>, vector<1x8x8xbf16>
    %89 = vector.shape_cast %88 : vector<1x8x8xbf16> to vector<8x8xbf16>
    %cst_53 = arith.constant dense<0.000000e+00> : vector<8x8xf32>
    %90 = tpu.matmul %85, %87, %cst_53 {dimension_numbers = #tpu.dot_dimension_numbers<[1], [1], [0], [0], [0, 0, 1, 0], [], []>} : vector<8x8xbf16>, vector<8x8xbf16>, vector<8x8xf32> -> vector<8x8xf32>
    %91 = arith.addf %90, %11 : vector<8x8xf32>
    %cst_54 = arith.constant dense<0xFF800000> : vector<8xf32>
    %92 = vector.multi_reduction <maximumf>, %91, %cst_54 [1] : vector<8x8xf32> to vector<8xf32>
    %93 = vector.shape_cast %92 : vector<8xf32> to vector<8x1xf32>
    %94 = vector.broadcast %93 : vector<8x1xf32> to vector<8x8xf32>
    %95 = arith.subf %91, %94 : vector<8x8xf32>
    %96 = math.exp %95 : vector<8x8xf32>
    %cst_55 = arith.constant dense<0.000000e+00> : vector<8xf32>
    %97 = vector.multi_reduction <add>, %96, %cst_55 [1] : vector<8x8xf32> to vector<8xf32>
    %98 = vector.shape_cast %97 : vector<8xf32> to vector<8x1xf32>
    %99 = tpu.reciprocal %98 {approx = true} : vector<8x1xf32> -> vector<8x1xf32>
    %100 = vector.broadcast %99 : vector<8x1xf32> to vector<8x8xf32>
    %101 = arith.mulf %96, %100 : vector<8x8xf32>
    %102 = arith.truncf %101 : vector<8x8xf32> to vector<8x8xbf16>
    %cst_56 = arith.constant dense<0.000000e+00> : vector<8x8xf32>
    %103 = tpu.matmul %102, %89, %cst_56 {dimension_numbers = #tpu.dot_dimension_numbers<[1], [0], [0], [1], [0, 0, 1, 1], [], []>} : vector<8x8xbf16>, vector<8x8xbf16>, vector<8x8xf32> -> vector<8x8xf32>
    %104 = arith.truncf %103 : vector<8x8xf32> to vector<8x8xbf16>
    %c0_57 = arith.constant 0 : index
    %c0_58 = arith.constant 0 : index
    %c24_59 = arith.constant 24 : index
    %105 = vector.load %arg7[%c0_57, %c0_58, %c24_59] : memref<1x8x32xbf16, #tpu.memory_space<vmem>>, vector<1x8x8xbf16>
    %106 = vector.shape_cast %105 : vector<1x8x8xbf16> to vector<8x8xbf16>
    %107 = vector.shape_cast %104 : vector<8x8xbf16> to vector<1x8x8xbf16>
    tpu.vector_store %arg7[%c0_57, %c0_58, %c24_59], %107 {strides = array<i32>} : memref<1x8x32xbf16, #tpu.memory_space<vmem>>, vector<1x8x8xbf16>,
    return
  }
  func.func @transform_0(%arg0: i32, %arg1: i32) -> (i32, i32, i32) {
    %c0_i32 = arith.constant 0 : i32
    %c0_i32_0 = arith.constant 0 : i32
    %c0_i32_1 = arith.constant 0 : i32
    return %arg0, %c0_i32, %c0_i32_0 : i32, i32, i32
  }
  func.func @transform_1(%arg0: i32, %arg1: i32) -> (i32, i32, i32) {
    %c0_i32 = arith.constant 0 : i32
    %c0_i32_0 = arith.constant 0 : i32
    %c0_i32_1 = arith.constant 0 : i32
    return %arg0, %c0_i32, %c0_i32_0 : i32, i32, i32
  }
  func.func @transform_2(%arg0: i32, %arg1: i32) -> (i32, i32, i32) {
    %c0_i32 = arith.constant 0 : i32
    %c0_i32_0 = arith.constant 0 : i32
    %c0_i32_1 = arith.constant 0 : i32
    return %arg0, %c0_i32, %c0_i32_0 : i32, i32, i32
  }
  func.func @transform_3(%arg0: i32, %arg1: i32) -> (i32, i32, i32) {
    %c0_i32 = arith.constant 0 : i32
    %c0_i32_0 = arith.constant 0 : i32
    %c0_i32_1 = arith.constant 0 : i32
    return %arg0, %c0_i32, %c0_i32_0 : i32, i32, i32
  }
  func.func @transform_4(%arg0: i32, %arg1: i32) -> (i32, i32, i32) {
    %c0_i32 = arith.constant 0 : i32
    %c0_i32_0 = arith.constant 0 : i32
    %c0_i32_1 = arith.constant 0 : i32
    return %arg0, %c0_i32, %c0_i32_0 : i32, i32, i32
  }
  func.func @transform_5(%arg0: i32, %arg1: i32) -> (i32, i32, i32) {
    %c0_i32 = arith.constant 0 : i32
    %c0_i32_0 = arith.constant 0 : i32
    %c0_i32_1 = arith.constant 0 : i32
    return %arg0, %c0_i32, %c0_i32_0 : i32, i32, i32
  }
}

module attributes {stable_mosaic.version = 11 : i64} {
  func.func @_ln_gemm_kernel(%arg0: i32, %arg1: memref<16x32xf32, #tpu.memory_space<vmem>>, %arg2: memref<1x32xf32, #tpu.memory_space<vmem>>, %arg3: memref<1x32xf32, #tpu.memory_space<vmem>>, %arg4: memref<32x96xbf16, #tpu.memory_space<vmem>>, %arg5: memref<1x96xf32, #tpu.memory_space<vmem>>, %arg6: memref<16x96xbf16, #tpu.memory_space<vmem>>, %arg7: memref<16x32xbf16, #tpu.memory_space<vmem>>) attributes {dimension_semantics = [#tpu.dimension_semantics<arbitrary>], iteration_bounds = array<i64: 1>, scalar_prefetch = 0 : i64, scratch_operands = 1 : i64, tpu.core_type = #tpu.core_type<tc>, window_params = [{pipeline_mode = #tpu.pipeline_mode<synchronous>, transform_indices = @transform_0, window_bounds = array<i64: 16, 32>}, {pipeline_mode = #tpu.pipeline_mode<synchronous>, transform_indices = @transform_1, window_bounds = array<i64: 1, 32>}, {pipeline_mode = #tpu.pipeline_mode<synchronous>, transform_indices = @transform_2, window_bounds = array<i64: 1, 32>}, {transform_indices = @transform_3, window_bounds = array<i64: 32, 96>}, {transform_indices = @transform_4, window_bounds = array<i64: 1, 96>}, {transform_indices = @transform_5, window_bounds = array<i64: 16, 96>}]} {
    %c0_i32 = arith.constant 0 : i32
    %0 = arith.cmpi eq, %arg0, %c0_i32 : i32
    %1 = arith.extui %0 : i1 to i32
    %c0_i32_0 = arith.constant 0 : i32
    %2 = arith.cmpi ne, %1, %c0_i32_0 : i32
    scf.if %2 {
      %c0_8 = arith.constant 0 : index
      %c0_9 = arith.constant 0 : index
      %11 = vector.load %arg1[%c0_8, %c0_9] : memref<16x32xf32, #tpu.memory_space<vmem>>, vector<16x32xf32>
      %c0_10 = arith.constant 0 : index
      %c0_11 = arith.constant 0 : index
      %12 = vector.load %arg2[%c0_10, %c0_11] : memref<1x32xf32, #tpu.memory_space<vmem>>, vector<1x32xf32>
      %c0_12 = arith.constant 0 : index
      %c0_13 = arith.constant 0 : index
      %13 = vector.load %arg3[%c0_12, %c0_13] : memref<1x32xf32, #tpu.memory_space<vmem>>, vector<1x32xf32>
      %cst_14 = arith.constant dense<0.000000e+00> : vector<16xf32>
      %14 = vector.multi_reduction <add>, %11, %cst_14 [1] : vector<16x32xf32> to vector<16xf32>
      %15 = vector.shape_cast %14 : vector<16xf32> to vector<16x1xf32>
      %cst_15 = arith.constant 3.200000e+01 : f32
      %16 = vector.broadcast %cst_15 : f32 to vector<16x1xf32>
      %17 = arith.divf %15, %16 : vector<16x1xf32>
      %18 = vector.broadcast %17 : vector<16x1xf32> to vector<16x32xf32>
      %19 = arith.subf %11, %18 : vector<16x32xf32>
      %20 = arith.mulf %19, %19 : vector<16x32xf32>
      %cst_16 = arith.constant dense<0.000000e+00> : vector<16xf32>
      %21 = vector.multi_reduction <add>, %20, %cst_16 [1] : vector<16x32xf32> to vector<16xf32>
      %22 = vector.shape_cast %21 : vector<16xf32> to vector<16x1xf32>
      %cst_17 = arith.constant 3.200000e+01 : f32
      %23 = vector.broadcast %cst_17 : f32 to vector<16x1xf32>
      %24 = arith.divf %22, %23 : vector<16x1xf32>
      %25 = vector.broadcast %17 : vector<16x1xf32> to vector<16x32xf32>
      %26 = arith.subf %11, %25 : vector<16x32xf32>
      %cst_18 = arith.constant 9.99999997E-7 : f32
      %27 = vector.broadcast %cst_18 : f32 to vector<16x1xf32>
      %28 = arith.addf %24, %27 : vector<16x1xf32>
      %29 = math.rsqrt %28 : vector<16x1xf32>
      %30 = vector.broadcast %29 : vector<16x1xf32> to vector<16x32xf32>
      %31 = arith.mulf %26, %30 : vector<16x32xf32>
      %32 = vector.broadcast %12 : vector<1x32xf32> to vector<16x32xf32>
      %33 = arith.mulf %31, %32 : vector<16x32xf32>
      %34 = vector.broadcast %13 : vector<1x32xf32> to vector<16x32xf32>
      %35 = arith.addf %33, %34 : vector<16x32xf32>
      %36 = arith.truncf %35 : vector<16x32xf32> to vector<16x32xbf16>
      %c0_19 = arith.constant 0 : index
      %c0_20 = arith.constant 0 : index
      %37 = vector.load %arg7[%c0_19, %c0_20] : memref<16x32xbf16, #tpu.memory_space<vmem>>, vector<16x32xbf16>
      tpu.vector_store %arg7[%c0_19, %c0_20], %36 {strides = array<i32>} : memref<16x32xbf16, #tpu.memory_space<vmem>>, vector<16x32xbf16>,
    } else {
    }
    %c0 = arith.constant 0 : index
    %c0_1 = arith.constant 0 : index
    %3 = vector.load %arg7[%c0, %c0_1] : memref<16x32xbf16, #tpu.memory_space<vmem>>, vector<16x32xbf16>
    %c0_2 = arith.constant 0 : index
    %c0_3 = arith.constant 0 : index
    %4 = vector.load %arg4[%c0_2, %c0_3] : memref<32x96xbf16, #tpu.memory_space<vmem>>, vector<32x96xbf16>
    %cst = arith.constant dense<0.000000e+00> : vector<16x96xf32>
    %5 = tpu.matmul %3, %4, %cst {dimension_numbers = #tpu.dot_dimension_numbers<[1], [0], [0], [1], [0, 0, 1, 1], [], []>} : vector<16x32xbf16>, vector<32x96xbf16>, vector<16x96xf32> -> vector<16x96xf32>
    %c0_4 = arith.constant 0 : index
    %c0_5 = arith.constant 0 : index
    %6 = vector.load %arg5[%c0_4, %c0_5] : memref<1x96xf32, #tpu.memory_space<vmem>>, vector<1x96xf32>
    %7 = vector.broadcast %6 : vector<1x96xf32> to vector<16x96xf32>
    %8 = arith.addf %5, %7 : vector<16x96xf32>
    %9 = arith.truncf %8 : vector<16x96xf32> to vector<16x96xbf16>
    %c0_6 = arith.constant 0 : index
    %c0_7 = arith.constant 0 : index
    %10 = vector.load %arg6[%c0_6, %c0_7] : memref<16x96xbf16, #tpu.memory_space<vmem>>, vector<16x96xbf16>
    tpu.vector_store %arg6[%c0_6, %c0_7], %9 {strides = array<i32>} : memref<16x96xbf16, #tpu.memory_space<vmem>>, vector<16x96xbf16>,
    return
  }
  func.func @transform_0(%arg0: i32) -> (i32, i32) {
    %c0_i32 = arith.constant 0 : i32
    %c0_i32_0 = arith.constant 0 : i32
    %c0_i32_1 = arith.constant 0 : i32
    return %c0_i32, %c0_i32_0 : i32, i32
  }
  func.func @transform_1(%arg0: i32) -> (i32, i32) {
    %c0_i32 = arith.constant 0 : i32
    %c0_i32_0 = arith.constant 0 : i32
    %c0_i32_1 = arith.constant 0 : i32
    return %c0_i32, %c0_i32_0 : i32, i32
  }
  func.func @transform_2(%arg0: i32) -> (i32, i32) {
    %c0_i32 = arith.constant 0 : i32
    %c0_i32_0 = arith.constant 0 : i32
    %c0_i32_1 = arith.constant 0 : i32
    return %c0_i32, %c0_i32_0 : i32, i32
  }
  func.func @transform_3(%arg0: i32) -> (i32, i32) {
    %c0_i32 = arith.constant 0 : i32
    %c0_i32_0 = arith.constant 0 : i32
    return %c0_i32, %arg0 : i32, i32
  }
  func.func @transform_4(%arg0: i32) -> (i32, i32) {
    %c0_i32 = arith.constant 0 : i32
    %c0_i32_0 = arith.constant 0 : i32
    return %c0_i32, %arg0 : i32, i32
  }
  func.func @transform_5(%arg0: i32) -> (i32, i32) {
    %c0_i32 = arith.constant 0 : i32
    %c0_i32_0 = arith.constant 0 : i32
    return %c0_i32, %arg0 : i32, i32
  }
}

module attributes {stable_mosaic.version = 11 : i64} {
  func.func @_gemm_residual_kernel(%arg0: i32, %arg1: i32, %arg2: memref<16x32xbf16, #tpu.memory_space<vmem>>, %arg3: memref<32x32xbf16, #tpu.memory_space<vmem>>, %arg4: memref<1x32xf32, #tpu.memory_space<vmem>>, %arg5: memref<16x32xf32, #tpu.memory_space<vmem>>, %arg6: memref<2x32xf32, #tpu.memory_space<vmem>>, %arg7: memref<16x32xf32, #tpu.memory_space<vmem>>, %arg8: memref<16x32xf32, #tpu.memory_space<vmem>>) attributes {dimension_semantics = [#tpu.dimension_semantics<parallel>, #tpu.dimension_semantics<arbitrary>], iteration_bounds = array<i64: 1, 1>, scalar_prefetch = 0 : i64, scratch_operands = 1 : i64, tpu.core_type = #tpu.core_type<tc>, window_params = [{pipeline_mode = #tpu.pipeline_mode<synchronous>, transform_indices = @transform_0, window_bounds = array<i64: 16, 32>}, {transform_indices = @transform_1, window_bounds = array<i64: 32, 32>}, {transform_indices = @transform_2, window_bounds = array<i64: 1, 32>}, {transform_indices = @transform_3, window_bounds = array<i64: 16, 32>}, {transform_indices = @transform_4, window_bounds = array<i64: 2, 32>}, {transform_indices = @transform_5, window_bounds = array<i64: 16, 32>}]} {
    %c0_i32 = arith.constant 0 : i32
    %0 = arith.cmpi eq, %arg1, %c0_i32 : i32
    %1 = arith.extui %0 : i1 to i32
    %c0_i32_0 = arith.constant 0 : i32
    %2 = arith.cmpi ne, %1, %c0_i32_0 : i32
    scf.if %2 {
      %cst_10 = arith.constant 0.000000e+00 : f32
      %12 = vector.broadcast %cst_10 : f32 to vector<16x32xf32>
      %c0_11 = arith.constant 0 : index
      %c0_12 = arith.constant 0 : index
      %13 = vector.load %arg8[%c0_11, %c0_12] : memref<16x32xf32, #tpu.memory_space<vmem>>, vector<16x32xf32>
      tpu.vector_store %arg8[%c0_11, %c0_12], %12 {strides = array<i32>} : memref<16x32xf32, #tpu.memory_space<vmem>>, vector<16x32xf32>,
    } else {
    }
    %c0 = arith.constant 0 : index
    %c0_1 = arith.constant 0 : index
    %3 = vector.load %arg2[%c0, %c0_1] : memref<16x32xbf16, #tpu.memory_space<vmem>>, vector<16x32xbf16>
    %c0_2 = arith.constant 0 : index
    %c0_3 = arith.constant 0 : index
    %4 = vector.load %arg8[%c0_2, %c0_3] : memref<16x32xf32, #tpu.memory_space<vmem>>, vector<16x32xf32>
    %c0_4 = arith.constant 0 : index
    %c0_5 = arith.constant 0 : index
    %5 = vector.load %arg3[%c0_4, %c0_5] : memref<32x32xbf16, #tpu.memory_space<vmem>>, vector<32x32xbf16>
    %cst = arith.constant dense<0.000000e+00> : vector<16x32xf32>
    %6 = tpu.matmul %3, %5, %cst {dimension_numbers = #tpu.dot_dimension_numbers<[1], [0], [0], [1], [0, 0, 1, 1], [], []>} : vector<16x32xbf16>, vector<32x32xbf16>, vector<16x32xf32> -> vector<16x32xf32>
    %7 = arith.addf %4, %6 : vector<16x32xf32>
    %c0_6 = arith.constant 0 : index
    %c0_7 = arith.constant 0 : index
    %8 = vector.load %arg8[%c0_6, %c0_7] : memref<16x32xf32, #tpu.memory_space<vmem>>, vector<16x32xf32>
    tpu.vector_store %arg8[%c0_6, %c0_7], %7 {strides = array<i32>} : memref<16x32xf32, #tpu.memory_space<vmem>>, vector<16x32xf32>,
    %c0_i32_8 = arith.constant 0 : i32
    %9 = arith.cmpi eq, %arg1, %c0_i32_8 : i32
    %10 = arith.extui %9 : i1 to i32
    %c0_i32_9 = arith.constant 0 : i32
    %11 = arith.cmpi ne, %10, %c0_i32_9 : i32
    scf.if %11 {
      %c0_10 = arith.constant 0 : index
      %c0_11 = arith.constant 0 : index
      %12 = vector.load %arg8[%c0_10, %c0_11] : memref<16x32xf32, #tpu.memory_space<vmem>>, vector<16x32xf32>
      %c0_12 = arith.constant 0 : index
      %c0_13 = arith.constant 0 : index
      %13 = vector.load %arg4[%c0_12, %c0_13] : memref<1x32xf32, #tpu.memory_space<vmem>>, vector<1x32xf32>
      %14 = vector.broadcast %13 : vector<1x32xf32> to vector<16x32xf32>
      %15 = arith.addf %12, %14 : vector<16x32xf32>
      %c0_14 = arith.constant 0 : index
      %c0_15 = arith.constant 0 : index
      %16 = vector.load %arg5[%c0_14, %c0_15] : memref<16x32xf32, #tpu.memory_space<vmem>>, vector<8x32xf32>
      %17 = vector.extract_strided_slice %15 {offsets = [0, 0], sizes = [8, 32], strides = [1, 1]} : vector<16x32xf32> to vector<8x32xf32>
      %c0_16 = arith.constant 0 : index
      %c0_17 = arith.constant 0 : index
      %18 = vector.load %arg6[%c0_16, %c0_17] : memref<2x32xf32, #tpu.memory_space<vmem>>, vector<1x32xf32>
      %19 = vector.broadcast %18 : vector<1x32xf32> to vector<8x32xf32>
      %20 = arith.mulf %17, %19 : vector<8x32xf32>
      %21 = arith.addf %16, %20 : vector<8x32xf32>
      %c0_18 = arith.constant 0 : index
      %c0_19 = arith.constant 0 : index
      %22 = vector.load %arg7[%c0_18, %c0_19] : memref<16x32xf32, #tpu.memory_space<vmem>>, vector<8x32xf32>
      tpu.vector_store %arg7[%c0_18, %c0_19], %21 {strides = array<i32>} : memref<16x32xf32, #tpu.memory_space<vmem>>, vector<8x32xf32>,
      %c8 = arith.constant 8 : index
      %c0_20 = arith.constant 0 : index
      %23 = vector.load %arg5[%c8, %c0_20] : memref<16x32xf32, #tpu.memory_space<vmem>>, vector<8x32xf32>
      %24 = vector.extract_strided_slice %15 {offsets = [8, 0], sizes = [8, 32], strides = [1, 1]} : vector<16x32xf32> to vector<8x32xf32>
      %c1 = arith.constant 1 : index
      %c0_21 = arith.constant 0 : index
      %25 = vector.load %arg6[%c1, %c0_21] : memref<2x32xf32, #tpu.memory_space<vmem>>, vector<1x32xf32>
      %26 = vector.broadcast %25 : vector<1x32xf32> to vector<8x32xf32>
      %27 = arith.mulf %24, %26 : vector<8x32xf32>
      %28 = arith.addf %23, %27 : vector<8x32xf32>
      %c8_22 = arith.constant 8 : index
      %c0_23 = arith.constant 0 : index
      %29 = vector.load %arg7[%c8_22, %c0_23] : memref<16x32xf32, #tpu.memory_space<vmem>>, vector<8x32xf32>
      tpu.vector_store %arg7[%c8_22, %c0_23], %28 {strides = array<i32>} : memref<16x32xf32, #tpu.memory_space<vmem>>, vector<8x32xf32>,
    } else {
    }
    return
  }
  func.func @transform_0(%arg0: i32, %arg1: i32) -> (i32, i32) {
    %c0_i32 = arith.constant 0 : i32
    %c0_i32_0 = arith.constant 0 : i32
    %c0_i32_1 = arith.constant 0 : i32
    return %c0_i32, %c0_i32_0 : i32, i32
  }
  func.func @transform_1(%arg0: i32, %arg1: i32) -> (i32, i32) {
    %c0_i32 = arith.constant 0 : i32
    return %arg1, %arg0 : i32, i32
  }
  func.func @transform_2(%arg0: i32, %arg1: i32) -> (i32, i32) {
    %c0_i32 = arith.constant 0 : i32
    %c0_i32_0 = arith.constant 0 : i32
    return %c0_i32, %arg0 : i32, i32
  }
  func.func @transform_3(%arg0: i32, %arg1: i32) -> (i32, i32) {
    %c0_i32 = arith.constant 0 : i32
    %c0_i32_0 = arith.constant 0 : i32
    return %c0_i32, %arg0 : i32, i32
  }
  func.func @transform_4(%arg0: i32, %arg1: i32) -> (i32, i32) {
    %c0_i32 = arith.constant 0 : i32
    %c0_i32_0 = arith.constant 0 : i32
    return %c0_i32, %arg0 : i32, i32
  }
  func.func @transform_5(%arg0: i32, %arg1: i32) -> (i32, i32) {
    %c0_i32 = arith.constant 0 : i32
    %c0_i32_0 = arith.constant 0 : i32
    return %c0_i32, %arg0 : i32, i32
  }
}

module attributes {stable_mosaic.version = 11 : i64} {
  func.func @_ln_gemm_kernel(%arg0: i32, %arg1: memref<16x32xf32, #tpu.memory_space<vmem>>, %arg2: memref<1x32xf32, #tpu.memory_space<vmem>>, %arg3: memref<1x32xf32, #tpu.memory_space<vmem>>, %arg4: memref<32x128xbf16, #tpu.memory_space<vmem>>, %arg5: memref<1x128xf32, #tpu.memory_space<vmem>>, %arg6: memref<16x128xbf16, #tpu.memory_space<vmem>>, %arg7: memref<16x32xbf16, #tpu.memory_space<vmem>>) attributes {dimension_semantics = [#tpu.dimension_semantics<arbitrary>], iteration_bounds = array<i64: 1>, scalar_prefetch = 0 : i64, scratch_operands = 1 : i64, tpu.core_type = #tpu.core_type<tc>, window_params = [{pipeline_mode = #tpu.pipeline_mode<synchronous>, transform_indices = @transform_0, window_bounds = array<i64: 16, 32>}, {pipeline_mode = #tpu.pipeline_mode<synchronous>, transform_indices = @transform_1, window_bounds = array<i64: 1, 32>}, {pipeline_mode = #tpu.pipeline_mode<synchronous>, transform_indices = @transform_2, window_bounds = array<i64: 1, 32>}, {transform_indices = @transform_3, window_bounds = array<i64: 32, 128>}, {transform_indices = @transform_4, window_bounds = array<i64: 1, 128>}, {transform_indices = @transform_5, window_bounds = array<i64: 16, 128>}]} {
    %c0_i32 = arith.constant 0 : i32
    %0 = arith.cmpi eq, %arg0, %c0_i32 : i32
    %1 = arith.extui %0 : i1 to i32
    %c0_i32_0 = arith.constant 0 : i32
    %2 = arith.cmpi ne, %1, %c0_i32_0 : i32
    scf.if %2 {
      %c0_9 = arith.constant 0 : index
      %c0_10 = arith.constant 0 : index
      %17 = vector.load %arg1[%c0_9, %c0_10] : memref<16x32xf32, #tpu.memory_space<vmem>>, vector<16x32xf32>
      %c0_11 = arith.constant 0 : index
      %c0_12 = arith.constant 0 : index
      %18 = vector.load %arg2[%c0_11, %c0_12] : memref<1x32xf32, #tpu.memory_space<vmem>>, vector<1x32xf32>
      %c0_13 = arith.constant 0 : index
      %c0_14 = arith.constant 0 : index
      %19 = vector.load %arg3[%c0_13, %c0_14] : memref<1x32xf32, #tpu.memory_space<vmem>>, vector<1x32xf32>
      %cst_15 = arith.constant dense<0.000000e+00> : vector<16xf32>
      %20 = vector.multi_reduction <add>, %17, %cst_15 [1] : vector<16x32xf32> to vector<16xf32>
      %21 = vector.shape_cast %20 : vector<16xf32> to vector<16x1xf32>
      %cst_16 = arith.constant 3.200000e+01 : f32
      %22 = vector.broadcast %cst_16 : f32 to vector<16x1xf32>
      %23 = arith.divf %21, %22 : vector<16x1xf32>
      %24 = vector.broadcast %23 : vector<16x1xf32> to vector<16x32xf32>
      %25 = arith.subf %17, %24 : vector<16x32xf32>
      %26 = arith.mulf %25, %25 : vector<16x32xf32>
      %cst_17 = arith.constant dense<0.000000e+00> : vector<16xf32>
      %27 = vector.multi_reduction <add>, %26, %cst_17 [1] : vector<16x32xf32> to vector<16xf32>
      %28 = vector.shape_cast %27 : vector<16xf32> to vector<16x1xf32>
      %cst_18 = arith.constant 3.200000e+01 : f32
      %29 = vector.broadcast %cst_18 : f32 to vector<16x1xf32>
      %30 = arith.divf %28, %29 : vector<16x1xf32>
      %31 = vector.broadcast %23 : vector<16x1xf32> to vector<16x32xf32>
      %32 = arith.subf %17, %31 : vector<16x32xf32>
      %cst_19 = arith.constant 9.99999997E-7 : f32
      %33 = vector.broadcast %cst_19 : f32 to vector<16x1xf32>
      %34 = arith.addf %30, %33 : vector<16x1xf32>
      %35 = math.rsqrt %34 : vector<16x1xf32>
      %36 = vector.broadcast %35 : vector<16x1xf32> to vector<16x32xf32>
      %37 = arith.mulf %32, %36 : vector<16x32xf32>
      %38 = vector.broadcast %18 : vector<1x32xf32> to vector<16x32xf32>
      %39 = arith.mulf %37, %38 : vector<16x32xf32>
      %40 = vector.broadcast %19 : vector<1x32xf32> to vector<16x32xf32>
      %41 = arith.addf %39, %40 : vector<16x32xf32>
      %42 = arith.truncf %41 : vector<16x32xf32> to vector<16x32xbf16>
      %c0_20 = arith.constant 0 : index
      %c0_21 = arith.constant 0 : index
      %43 = vector.load %arg7[%c0_20, %c0_21] : memref<16x32xbf16, #tpu.memory_space<vmem>>, vector<16x32xbf16>
      tpu.vector_store %arg7[%c0_20, %c0_21], %42 {strides = array<i32>} : memref<16x32xbf16, #tpu.memory_space<vmem>>, vector<16x32xbf16>,
    } else {
    }
    %c0 = arith.constant 0 : index
    %c0_1 = arith.constant 0 : index
    %3 = vector.load %arg7[%c0, %c0_1] : memref<16x32xbf16, #tpu.memory_space<vmem>>, vector<16x32xbf16>
    %c0_2 = arith.constant 0 : index
    %c0_3 = arith.constant 0 : index
    %4 = vector.load %arg4[%c0_2, %c0_3] : memref<32x128xbf16, #tpu.memory_space<vmem>>, vector<32x128xbf16>
    %cst = arith.constant dense<0.000000e+00> : vector<16x128xf32>
    %5 = tpu.matmul %3, %4, %cst {dimension_numbers = #tpu.dot_dimension_numbers<[1], [0], [0], [1], [0, 0, 1, 1], [], []>} : vector<16x32xbf16>, vector<32x128xbf16>, vector<16x128xf32> -> vector<16x128xf32>
    %c0_4 = arith.constant 0 : index
    %c0_5 = arith.constant 0 : index
    %6 = vector.load %arg5[%c0_4, %c0_5] : memref<1x128xf32, #tpu.memory_space<vmem>>, vector<1x128xf32>
    %7 = vector.broadcast %6 : vector<1x128xf32> to vector<16x128xf32>
    %8 = arith.addf %5, %7 : vector<16x128xf32>
    %9 = arith.negf %8 : vector<16x128xf32>
    %10 = math.exp %9 : vector<16x128xf32>
    %cst_6 = arith.constant 1.000000e+00 : f32
    %11 = vector.broadcast %cst_6 : f32 to vector<16x128xf32>
    %12 = arith.addf %11, %10 : vector<16x128xf32>
    %13 = arith.divf %11, %12 : vector<16x128xf32>
    %14 = arith.mulf %8, %13 : vector<16x128xf32>
    %15 = arith.truncf %14 : vector<16x128xf32> to vector<16x128xbf16>
    %c0_7 = arith.constant 0 : index
    %c0_8 = arith.constant 0 : index
    %16 = vector.load %arg6[%c0_7, %c0_8] : memref<16x128xbf16, #tpu.memory_space<vmem>>, vector<16x128xbf16>
    tpu.vector_store %arg6[%c0_7, %c0_8], %15 {strides = array<i32>} : memref<16x128xbf16, #tpu.memory_space<vmem>>, vector<16x128xbf16>,
    return
  }
  func.func @transform_0(%arg0: i32) -> (i32, i32) {
    %c0_i32 = arith.constant 0 : i32
    %c0_i32_0 = arith.constant 0 : i32
    %c0_i32_1 = arith.constant 0 : i32
    return %c0_i32, %c0_i32_0 : i32, i32
  }
  func.func @transform_1(%arg0: i32) -> (i32, i32) {
    %c0_i32 = arith.constant 0 : i32
    %c0_i32_0 = arith.constant 0 : i32
    %c0_i32_1 = arith.constant 0 : i32
    return %c0_i32, %c0_i32_0 : i32, i32
  }
  func.func @transform_2(%arg0: i32) -> (i32, i32) {
    %c0_i32 = arith.constant 0 : i32
    %c0_i32_0 = arith.constant 0 : i32
    %c0_i32_1 = arith.constant 0 : i32
    return %c0_i32, %c0_i32_0 : i32, i32
  }
  func.func @transform_3(%arg0: i32) -> (i32, i32) {
    %c0_i32 = arith.constant 0 : i32
    %c0_i32_0 = arith.constant 0 : i32
    return %c0_i32, %arg0 : i32, i32
  }
  func.func @transform_4(%arg0: i32) -> (i32, i32) {
    %c0_i32 = arith.constant 0 : i32
    %c0_i32_0 = arith.constant 0 : i32
    return %c0_i32, %arg0 : i32, i32
  }
  func.func @transform_5(%arg0: i32) -> (i32, i32) {
    %c0_i32 = arith.constant 0 : i32
    %c0_i32_0 = arith.constant 0 : i32
    return %c0_i32, %arg0 : i32, i32
  }
}

module attributes {stable_mosaic.version = 11 : i64} {
  func.func @_gemm_residual_kernel(%arg0: i32, %arg1: i32, %arg2: memref<16x128xbf16, #tpu.memory_space<vmem>>, %arg3: memref<128x32xbf16, #tpu.memory_space<vmem>>, %arg4: memref<1x32xf32, #tpu.memory_space<vmem>>, %arg5: memref<16x32xf32, #tpu.memory_space<vmem>>, %arg6: memref<2x32xf32, #tpu.memory_space<vmem>>, %arg7: memref<16x32xf32, #tpu.memory_space<vmem>>, %arg8: memref<16x32xf32, #tpu.memory_space<vmem>>) attributes {dimension_semantics = [#tpu.dimension_semantics<parallel>, #tpu.dimension_semantics<arbitrary>], iteration_bounds = array<i64: 1, 1>, scalar_prefetch = 0 : i64, scratch_operands = 1 : i64, tpu.core_type = #tpu.core_type<tc>, window_params = [{pipeline_mode = #tpu.pipeline_mode<synchronous>, transform_indices = @transform_0, window_bounds = array<i64: 16, 128>}, {transform_indices = @transform_1, window_bounds = array<i64: 128, 32>}, {transform_indices = @transform_2, window_bounds = array<i64: 1, 32>}, {transform_indices = @transform_3, window_bounds = array<i64: 16, 32>}, {transform_indices = @transform_4, window_bounds = array<i64: 2, 32>}, {transform_indices = @transform_5, window_bounds = array<i64: 16, 32>}]} {
    %c0_i32 = arith.constant 0 : i32
    %0 = arith.cmpi eq, %arg1, %c0_i32 : i32
    %1 = arith.extui %0 : i1 to i32
    %c0_i32_0 = arith.constant 0 : i32
    %2 = arith.cmpi ne, %1, %c0_i32_0 : i32
    scf.if %2 {
      %cst_10 = arith.constant 0.000000e+00 : f32
      %12 = vector.broadcast %cst_10 : f32 to vector<16x32xf32>
      %c0_11 = arith.constant 0 : index
      %c0_12 = arith.constant 0 : index
      %13 = vector.load %arg8[%c0_11, %c0_12] : memref<16x32xf32, #tpu.memory_space<vmem>>, vector<16x32xf32>
      tpu.vector_store %arg8[%c0_11, %c0_12], %12 {strides = array<i32>} : memref<16x32xf32, #tpu.memory_space<vmem>>, vector<16x32xf32>,
    } else {
    }
    %c0 = arith.constant 0 : index
    %c0_1 = arith.constant 0 : index
    %3 = vector.load %arg2[%c0, %c0_1] : memref<16x128xbf16, #tpu.memory_space<vmem>>, vector<16x128xbf16>
    %c0_2 = arith.constant 0 : index
    %c0_3 = arith.constant 0 : index
    %4 = vector.load %arg8[%c0_2, %c0_3] : memref<16x32xf32, #tpu.memory_space<vmem>>, vector<16x32xf32>
    %c0_4 = arith.constant 0 : index
    %c0_5 = arith.constant 0 : index
    %5 = vector.load %arg3[%c0_4, %c0_5] : memref<128x32xbf16, #tpu.memory_space<vmem>>, vector<128x32xbf16>
    %cst = arith.constant dense<0.000000e+00> : vector<16x32xf32>
    %6 = tpu.matmul %3, %5, %cst {dimension_numbers = #tpu.dot_dimension_numbers<[1], [0], [0], [1], [0, 0, 1, 1], [], []>} : vector<16x128xbf16>, vector<128x32xbf16>, vector<16x32xf32> -> vector<16x32xf32>
    %7 = arith.addf %4, %6 : vector<16x32xf32>
    %c0_6 = arith.constant 0 : index
    %c0_7 = arith.constant 0 : index
    %8 = vector.load %arg8[%c0_6, %c0_7] : memref<16x32xf32, #tpu.memory_space<vmem>>, vector<16x32xf32>
    tpu.vector_store %arg8[%c0_6, %c0_7], %7 {strides = array<i32>} : memref<16x32xf32, #tpu.memory_space<vmem>>, vector<16x32xf32>,
    %c0_i32_8 = arith.constant 0 : i32
    %9 = arith.cmpi eq, %arg1, %c0_i32_8 : i32
    %10 = arith.extui %9 : i1 to i32
    %c0_i32_9 = arith.constant 0 : i32
    %11 = arith.cmpi ne, %10, %c0_i32_9 : i32
    scf.if %11 {
      %c0_10 = arith.constant 0 : index
      %c0_11 = arith.constant 0 : index
      %12 = vector.load %arg8[%c0_10, %c0_11] : memref<16x32xf32, #tpu.memory_space<vmem>>, vector<16x32xf32>
      %c0_12 = arith.constant 0 : index
      %c0_13 = arith.constant 0 : index
      %13 = vector.load %arg4[%c0_12, %c0_13] : memref<1x32xf32, #tpu.memory_space<vmem>>, vector<1x32xf32>
      %14 = vector.broadcast %13 : vector<1x32xf32> to vector<16x32xf32>
      %15 = arith.addf %12, %14 : vector<16x32xf32>
      %c0_14 = arith.constant 0 : index
      %c0_15 = arith.constant 0 : index
      %16 = vector.load %arg5[%c0_14, %c0_15] : memref<16x32xf32, #tpu.memory_space<vmem>>, vector<8x32xf32>
      %17 = vector.extract_strided_slice %15 {offsets = [0, 0], sizes = [8, 32], strides = [1, 1]} : vector<16x32xf32> to vector<8x32xf32>
      %c0_16 = arith.constant 0 : index
      %c0_17 = arith.constant 0 : index
      %18 = vector.load %arg6[%c0_16, %c0_17] : memref<2x32xf32, #tpu.memory_space<vmem>>, vector<1x32xf32>
      %19 = vector.broadcast %18 : vector<1x32xf32> to vector<8x32xf32>
      %20 = arith.mulf %17, %19 : vector<8x32xf32>
      %21 = arith.addf %16, %20 : vector<8x32xf32>
      %c0_18 = arith.constant 0 : index
      %c0_19 = arith.constant 0 : index
      %22 = vector.load %arg7[%c0_18, %c0_19] : memref<16x32xf32, #tpu.memory_space<vmem>>, vector<8x32xf32>
      tpu.vector_store %arg7[%c0_18, %c0_19], %21 {strides = array<i32>} : memref<16x32xf32, #tpu.memory_space<vmem>>, vector<8x32xf32>,
      %c8 = arith.constant 8 : index
      %c0_20 = arith.constant 0 : index
      %23 = vector.load %arg5[%c8, %c0_20] : memref<16x32xf32, #tpu.memory_space<vmem>>, vector<8x32xf32>
      %24 = vector.extract_strided_slice %15 {offsets = [8, 0], sizes = [8, 32], strides = [1, 1]} : vector<16x32xf32> to vector<8x32xf32>
      %c1 = arith.constant 1 : index
      %c0_21 = arith.constant 0 : index
      %25 = vector.load %arg6[%c1, %c0_21] : memref<2x32xf32, #tpu.memory_space<vmem>>, vector<1x32xf32>
      %26 = vector.broadcast %25 : vector<1x32xf32> to vector<8x32xf32>
      %27 = arith.mulf %24, %26 : vector<8x32xf32>
      %28 = arith.addf %23, %27 : vector<8x32xf32>
      %c8_22 = arith.constant 8 : index
      %c0_23 = arith.constant 0 : index
      %29 = vector.load %arg7[%c8_22, %c0_23] : memref<16x32xf32, #tpu.memory_space<vmem>>, vector<8x32xf32>
      tpu.vector_store %arg7[%c8_22, %c0_23], %28 {strides = array<i32>} : memref<16x32xf32, #tpu.memory_space<vmem>>, vector<8x32xf32>,
    } else {
    }
    return
  }
  func.func @transform_0(%arg0: i32, %arg1: i32) -> (i32, i32) {
    %c0_i32 = arith.constant 0 : i32
    %c0_i32_0 = arith.constant 0 : i32
    %c0_i32_1 = arith.constant 0 : i32
    return %c0_i32, %c0_i32_0 : i32, i32
  }
  func.func @transform_1(%arg0: i32, %arg1: i32) -> (i32, i32) {
    %c0_i32 = arith.constant 0 : i32
    return %arg1, %arg0 : i32, i32
  }
  func.func @transform_2(%arg0: i32, %arg1: i32) -> (i32, i32) {
    %c0_i32 = arith.constant 0 : i32
    %c0_i32_0 = arith.constant 0 : i32
    return %c0_i32, %arg0 : i32, i32
  }
  func.func @transform_3(%arg0: i32, %arg1: i32) -> (i32, i32) {
    %c0_i32 = arith.constant 0 : i32
    %c0_i32_0 = arith.constant 0 : i32
    return %c0_i32, %arg0 : i32, i32
  }
  func.func @transform_4(%arg0: i32, %arg1: i32) -> (i32, i32) {
    %c0_i32 = arith.constant 0 : i32
    %c0_i32_0 = arith.constant 0 : i32
    return %c0_i32, %arg0 : i32, i32
  }
  func.func @transform_5(%arg0: i32, %arg1: i32) -> (i32, i32) {
    %c0_i32 = arith.constant 0 : i32
    %c0_i32_0 = arith.constant 0 : i32
    return %c0_i32, %arg0 : i32, i32
  }
}

</mosaic_0001>

<bundles_post_ra>
// kernel: individual_token_refiner.10
= control target key start
LH: loop header
LB: loop body
LE: loop exit
PB: predicated region body
PF: predicated region fallthrough
CT: control target
= control target key end

     0   :  { %vm29_vm0 = vcmask 261120   ;;  %v176_v4 = vmov 32.0   ;;  %vm93_vm6 = vcmask 257024   ;;  %vm143_vm9 = vcmask 781312   ;;  %s239_s0 = inlined_call_operand.vmem [shape: f32[16,32], index: 0, kind: input, shape index: {}]   ;;  %s240_s1 = inlined_call_operand.vmem [shape: f32[1,32], index: 1, kind: input, shape index: {}]   ;;  %s241_s2 = inlined_call_operand.vmem [shape: f32[1,32], index: 2, kind: input, shape index: {}]   ;;  %s242_s4 = inlined_call_operand.vmem [shape: f32[1,96], index: 4, kind: input, shape index: {}]   ;;  %s243_s3 = inlined_call_operand.vmem [shape: bf16[32,96], index: 3, kind: input, shape index: {}]   ;;  %s244_s5 = inlined_call_operand.vmem [shape: bf16[16,96], index: 5, kind: output, shape index: {}]  }
   0x1   :  { %v25_v0 = vld [vmem:[%s239_s0] sm:$0xff]  ;;  %v26_v2 = vld [vmem:[%s239_s0 + $0x8] sm:$0xff]  ;;  %170 = vrcp.f32 %v176_v4 }
   0x2   :  { %v30_v1 = vsel %vm29_vm0, %v25_v0, 0.0  ;;  %v33_v3 = vsel %vm29_vm0, %v26_v2, 0.0  ;;  %v165_v24 = vld [vmem:[%s243_s3 + $0x8] sm:$0xff]  ;;  %v164_v27 = vld [vmem:[%s243_s3] sm:$0xff] }
   0x3   :  { %31 = vadd.xlane.f32.xlu0 %v30_v1  ;;  %133 = vmatpush.bf16.msra.mxu0 %v165_v24  ;;  %v167_v37 = vld [vmem:[%s240_s1] ss:$0 sm:$0xff] }
   0x4   :  { %v168_v40 = vld [vmem:[%s241_s2] ss:$0 sm:$0xff] }
   0x5   :  { %v169_v54 = vld [vmem:[%s242_s4] ss:$0 sm:$0xff] }
   0x7   :  { %v171_v5 = vpop.eup %170  ;;  %134 = vmatpush.bf16.msra.mxu0 %v164_v27 }
   0x8   :  { %v37_v6 = vmul.f32 32.0, %v171_v5  ;;  %vm41_vm1 = vweird.f32 %v171_v5 }
   0xa   :  { %v38_v7 = vsub.f32 1.0, %v37_v6 }
   0xb   :  { %34 = vadd.xlane.f32.xlu0 %v33_v3 }
   0xc   :  { %v39_v8 = vmul.f32 %v171_v5, %v38_v7 }
   0xe   :  { %v40_v9 = vadd.f32 %v171_v5, %v39_v8 }
  0x10   :  { %v42_v10 = vsel %vm41_vm1, %v171_v5, %v40_v9 }
  0x76   :  { %v32_v11 = vpop.xlane.xlu0 %31 }
  0x77   :  { %v43_v12 = vmul.f32 %v42_v10, %v32_v11 }
  0x79   :  { %v45_v13 = vsub.f32 %v25_v0, %v43_v12 }
  0x7b   :  { %v47_v14 = vmul.f32 %v45_v13, %v45_v13 }
  0x7d   :  { %v49_v15 = vsel %vm29_vm0, %v47_v14, 0.0 }
  0x7e   :  { %50 = vadd.xlane.f32.xlu1 %v49_v15  ;;  %v35_v16 = vpop.xlane.xlu0 %34 }
  0x7f   :  { %v44_v17 = vmul.f32 %v42_v10, %v35_v16 }
  0x81   :  { %v46_v18 = vsub.f32 %v26_v2, %v44_v17 }
  0x83   :  { %v48_v19 = vmul.f32 %v46_v18, %v46_v18 }
  0x85   :  { %v52_v20 = vsel %vm29_vm0, %v48_v19, 0.0 }
  0x86   :  { %53 = vadd.xlane.f32.xlu1 %v52_v20 }
  0xf1   :  { %v51_v21 = vpop.xlane.xlu1 %50 }
  0xf2   :  { %v55_v22 = vmul.f32 %v51_v21, %v42_v10 }
  0xf4   :  { %v57_v23 = vadd.f32 1e-06, %v55_v22 }
  0xf6   :  { %172 = vrsqrt.f32 %v57_v23  ;;  %vm65_vm3 = vweird.f32 %v57_v23 }
  0xf9   :  { %v54_v25 = vpop.xlane.xlu1 %53 }
  0xfa   :  { %v56_v26 = vmul.f32 %v54_v25, %v42_v10 }
  0xfc   :  { %v173_v28 = vpop.eup %172  ;;  %v58_v29 = vadd.f32 1e-06, %v56_v26 }
  0xfd   :  { %v60_v30 = vmul.f32 %v173_v28, %v57_v23  ;;  %vm66_vm2 = vweird.f32 %v173_v28 }
  0xfe   :  { %174 = vrsqrt.f32 %v58_v29  ;;  %vm67_vm4 = vmor %vm65_vm3, %vm66_vm2  ;;  %vm75_vm7 = vweird.f32 %v58_v29 }
  0xff   :  { %v61_v31 = vmul.f32 %v173_v28, %v60_v30 }
 0x101   :  { %v62_v32 = vmul.f32 0.5, %v61_v31 }
 0x103   :  { %v63_v33 = vsub.f32 1.5, %v62_v32 }
 0x104   :  { %v175_v34 = vpop.eup %174 }
 0x105   :  { %v64_v35 = vmul.f32 %v173_v28, %v63_v33  ;;  %v70_v36 = vmul.f32 %v175_v34, %v58_v29  ;;  %vm76_vm5 = vweird.f32 %v175_v34 }
 0x106   :  { %vm77_vm8 = vmor %vm75_vm7, %vm76_vm5 }
 0x107   :  { %v68_v38 = vsel %vm67_vm4, %v173_v28, %v64_v35  ;;  %v71_v39 = vmul.f32 %v175_v34, %v70_v36 }
 0x108   :  { %v79_v41 = vmul.f32 %v68_v38, %v45_v13 }
 0x109   :  { %v72_v42 = vmul.f32 0.5, %v71_v39 }
 0x10a   :  { %v84_v43 = vmul.f32 %v167_v37, %v79_v41 }
 0x10b   :  { %v73_v44 = vsub.f32 1.5, %v72_v42 }
 0x10c   :  { %v89_v45 = vadd.f32 %v168_v40, %v84_v43 }
 0x10d   :  { %v74_v46 = vmul.f32 %v175_v34, %v73_v44 }
 0x10e   :  { %v91_v47 = vpack.c.bf16 %v89_v45, %v89_v45 }
 0x10f   :  { %v78_v48 = vsel %vm77_vm8, %v175_v34, %v74_v46 }
 0x110   :  { %94 = vst.msk [vmem:[#allocation2] sm:$0xf] %vm93_vm6, %v91_v47  ;;  %v80_v49 = vmul.f32 %v78_v48, %v46_v18 }
 0x112   :  { %v85_v50 = vmul.f32 %v167_v37, %v80_v49 }
 0x114   :  { %v90_v51 = vadd.f32 %v168_v40, %v85_v50 }
 0x116   :  { %v92_v52 = vpack.c.bf16 %v90_v51, %v90_v51 }
 0x118   :  { %95 = vst.msk [vmem:[#allocation2 + $0x4] sm:$0xf] %vm93_vm6, %v92_v52 }
 0x11f   :  { %v163_v53 = vld [vmem:[#allocation2] sm:$0xff] }
 0x120   :  { %162 = vmatmul.msk.bf16.vlgmr.msra.gmra.mxu0 %vm29_vm0, %v163_v53 }
 0x19d   :  { %v136_v55 = vpop.f32.mrf.mxu0 }
 0x19e   :  { %v137_v56 = vadd.f32 %v169_v54, %v136_v55 }
 0x1a0   :  { %v141_v57 = vpack.c.bf16 %v137_v56, %v137_v56 }
 0x1a2   :  { %144 = vst.msk [vmem:[%s244_s5] sm:$0xf] %vm143_vm9, %v141_v57 }
 0x1a5   :  { %v138_v58 = vpop.f32.mrf.mxu0 }
 0x1a6   :  { %v139_v59 = vadd.f32 %v169_v54, %v138_v58 }
 0x1a8   :  { %v142_v60 = vpack.c.bf16 %v139_v59, %v139_v59 }
 0x1aa   :  { %145 = vst.msk [vmem:[%s244_s5 + $0x4] sm:$0xf] %vm143_vm9, %v142_v60 }

// kernel: individual_token_refiner.11
= control target key start
LH: loop header
LB: loop body
LE: loop exit
PB: predicated region body
PF: predicated region fallthrough
CT: control target
= control target key end

     0   :  { %s855_s18 = smov 0   ;;  %s857_s19 = smov 0   ;;  %s960_s0 = inlined_call_operand.vmem [shape: f32[2,1,8], index: 0, kind: input, shape index: {}]   ;;  %s961_s1 = inlined_call_operand.vmem [shape: f32[2,8,1], index: 1, kind: input, shape index: {}]   ;;  %s962_s2 = inlined_call_operand.vmem [shape: bf16[2,8,96], index: 2, kind: input, shape index: {}, may-alias: {2,3,4}]   ;;  %s963_s3 = inlined_call_operand.vmem [shape: bf16[2,8,96], index: 3, kind: input, shape index: {}, may-alias: {2,3,4}]   ;;  %s964_s4 = inlined_call_operand.vmem [shape: bf16[2,8,96], index: 4, kind: input, shape index: {}, may-alias: {2,3,4}]   ;;  %s965_s5 = inlined_call_operand.vmem [shape: bf16[2,8,32], index: 5, kind: output, shape index: {}]  }
   0x1   :  { %s859_s20 = smov 0  }
   0x2 LB: > { %s27_s21 = sadd.s32 1, %s803_s19  ;;  %p711_p0 = scmp.ge.s32.totalorder %s807_s20, 1  ;;  %s807_s20 = sphi %s859_s20, %s15_s20   ;;  %s803_s19 = sphi %s857_s19, %s967_s19   ;;  %s799_s18 = sphi %s855_s18, %s966_s18  }
   0x3   : > { %p29_p1 = scmp.ge.s32.totalorder %s27_s21, 2  ;;  %p233_p2 = scmp.lt.s32.totalorder %s807_s20, 3 }
   0x5   : > { %s969_s21 = smov (%p29_p1, %s27_s21), 0  ;;  %p234_p3 = pnand %p711_p0, %p233_p2 }
   0x6   : > { %p274_p4 = scmp.lt.s32.totalorder (!%p234_p3), %s799_s18, 1  ;;  %s809_s26 = smov (!%p234_p3), 96  }
   0x7   : > { %237 = sbr.rel (%p234_p3) target bundleno = 1179 (0x49b), region = 40  ;;  %s812_s12 = smov (!%p234_p3), 120  }
   0x8   : > { %s813_s13 = smov (!%p234_p3), 88   ;;  %s814_s17 = smov (!%p234_p3), 64  }
   0x9   : > { %s816_s23 = smov (!%p234_p3), 104   ;;  %s817_s24 = smov (!%p234_p3), 112  }
   0xa   : > { %s822_s6 = smov (!%p234_p3), 8   ;;  %s823_s7 = smov (!%p234_p3), 24  }
   0xc   : > { %s971_s18 = smov (!%p274_p4, %s799_s18), 1  ;;  %v810_v4 = vmov 0   ;;  %vm319_vm0 = vcmask 64512   ;;  %v811_v12 = vmov -1e+09   ;;  %vm359_vm2 = vcmask 1043456  }
   0xd   : > { %s873_s22 = sshll.u32 %s971_s18, 2  ;;  %s276_s29 = scalar_lea.vmem %s960_s0, %s971_s18  ;;  %767 = vset.pattern.permute.xlu0 %v810_v4  ;;  %vm377_vm3 = vcmask 60416   ;;  %vm452_vm4 = vcmask 126016   ;;  %vm527_vm5 = vcmask 191616   ;;  %vm602_vm6 = vcmask 257216  }
   0xe   : > { %s879_s25 = scalar_lea.vmem %s963_s3, %s873_s22  ;;  %s712_s30 = sshll.u32 %s971_s18, 3  ;;  %v768_v8 = vld [vmem:[%s276_s29] ss:$0 sm:$0xff] }
   0xf   : > { %v312_v0 = vld [vmem:[%s879_s25] sm:$0xf]  ;;  %s280_s8 = scalar_lea.vmem %s961_s1, %s712_s30  ;;  %s893_s11 = scalar_lea.vmem %s962_s2, %s873_s22 }
  0x10   : > { %v315_v1 = vunpack.c.l.b16 %v312_v0  ;;  %v299_v3 = vld [vmem:[%s280_s8] sm:$0xff]  ;;  %s907_s16 = scalar_lea.vmem %s964_s4, %s873_s22  ;;  %s815_s18 = smov 80  }
  0x11   : > { %v311_v7 = vld [vmem:[%s893_s11] sm:$0xf]  ;;  %s929_s28 = scalar_lea.vmem %s965_s5, %s873_s22  ;;  %s819_s22 = smov 56  }
  0x12   : > { %v316_v2 = vpack.c.b16 %v315_v1, %v315_v1  ;;  %v379_v11 = vld [vmem:[%s893_s11] sm:$0xf]  ;;  %s820_s29 = smov 40   ;;  %s821_s30 = smov 48  }
  0x13   : > { %v383_v14 = vunpack.c.l.b16 %v379_v11  ;;  %v380_v20 = vld [vmem:[%s879_s25] sm:$0xf]  ;;  %s824_s8 = smov 16  }
  0x14   : > { %317 = vrot.lane.b32.xlu0 %v316_v2, %s809_s26  ;;  %v388_v21 = vunpack.c.l.b16 %v380_v20  ;;  %v313_v23 = vld [vmem:[%s907_s16] sm:$0xf]  ;;  %s818_s26 = smov 72  }
  0x15   : > { %v384_v16 = vpack.c.b16 %v383_v14, %v383_v14  ;;  %v352_v24 = vunpack.c.l.b16 %v313_v23  ;;  %v455_v26 = vld [vmem:[%s879_s25] sm:$0xf] }
  0x16   : > { %v389_v22 = vpack.c.b16 %v388_v21, %v388_v21  ;;  %v463_v27 = vunpack.c.l.b16 %v455_v26  ;;  %v529_v29 = vld [vmem:[%s893_s11] sm:$0xf] }
  0x17   : > { %385 = vrot.lane.b32.xlu2 %v384_v16, %s812_s12  ;;  %v353_v25 = vpack.c.b16 %v352_v24, %v352_v24  ;;  %v533_v30 = vunpack.c.l.b16 %v529_v29  ;;  %v454_v34 = vld [vmem:[%s893_s11] sm:$0xf] }
  0x18   : > { %v464_v28 = vpack.c.b16 %v463_v27, %v463_v27  ;;  %v458_v35 = vunpack.c.l.b16 %v454_v34  ;;  %v530_v42 = vld [vmem:[%s879_s25] sm:$0xf] }
  0x19   : > { %v534_v31 = vpack.c.b16 %v533_v30, %v533_v30  ;;  %v538_v43 = vunpack.c.l.b16 %v530_v42  ;;  %v531_v27 = vld [vmem:[%s907_s16] sm:$0xf] }
  0x1a   : > { %v459_v37 = vpack.c.b16 %v458_v35, %v458_v35  ;;  %v574_v29 = vunpack.c.l.b16 %v531_v27  ;;  %v456_v35 = vld [vmem:[%s907_s16] sm:$0xf] }
  0x1b   : > { %v539_v45 = vpack.c.b16 %v538_v43, %v538_v43 }
  0x1c   : > { %305 = vperm.xlu0 %767, %v299_v3   ;;  %v575_v30 = vpack.c.b16 %v574_v29, %v574_v29 }
  0x24   : > { %354 = vrot.lane.b32.xlu0 %v353_v25, %s814_s17 }
  0x2c   : > { %465 = vrot.lane.b32.xlu0 %v464_v28, %s815_s18 }
  0x34   : > { %535 = vrot.lane.b32.xlu0 %v534_v31, %s816_s23 }
  0x71   : > { %v386_v44 = vpop.permute.xlu2 %385 }
  0x86   : > { %v318_v5 = vpop.permute.xlu0 %317 }
  0x87   : > { %v324_v6 = vsel %vm319_vm0, %v318_v5, 0 }
  0x88   : > { %333 = vmatpush.bf16.xpose.msra.mxu0 %v324_v6 }
  0x8e   : > { %v306_v9 = vpop.permute.xlu0 %305 }
  0x8f   : > { %717 = vmatmul.msk.bf16.vlgmr.msra.gmra.mxu0 %vm319_vm0, %v311_v7  ;;  %v308_v10 = vadd.f32 %v768_v8, %v306_v9 }
  0x91   : > { %vm309_vm1 = vcmp.gt.f32.partialorder %v308_v10, 0.0 }
  0x92   : > { %v898_v13 = vsel %vm309_vm1, 0.0, %v811_v12 }
  0x96   : > { %v355_v46 = vpop.permute.xlu0 %354 }
  0x97   : > { %v361_v47 = vsel %vm359_vm2, %v355_v46, 0 }
  0x98   : > { %370 = vmatpush.bf16.msra.mxu1 %v361_v47 }
  0x9e   : > { %v466_v48 = vpop.permute.xlu0 %465 }
  0x9f   : > { %v471_v49 = vsel %vm319_vm0, %v466_v48, 0 }
  0xa0   : > { %480 = vmatpush.bf16.xpose.msrb.mxu1 %v471_v49 }
  0xa6   : > { %v536_v56 = vpop.permute.xlu0 %535 }
 0x10c   : > { %v335_v15 = vpop.f32.mrf.mxu0 }
 0x10d   : > { %v336_v17 = vadd.f32 %v335_v15, %v898_v13  ;;  %v381_v15 = vld [vmem:[%s907_s16] sm:$0xf] }
 0x10e   : > { %v424_v16 = vunpack.c.l.b16 %v381_v15 }
 0x10f   : > { %v339_v18 = vsel %vm319_vm0, %v336_v17, -inf }
 0x110   : > { %340 = vmax.xlane.f32.xlu1 %v339_v18 }
 0x114   : > { %v337_v19 = vpop.f32.mrf.mxu0 }
 0x129   : > { %390 = vrot.lane.b32.xlu1 %v389_v22, %s813_s13 }
 0x131   : > { %460 = vrot.lane.b32.xlu1 %v459_v37, %s817_s24  ;;  %v499_v37 = vunpack.c.l.b16 %v456_v35 }
 0x183   : > { %v341_v32 = vpop.xlane.xlu1 %340 }
 0x184   : > { %v342_v33 = vsub.f32 %v336_v17, %v341_v32  ;;  %v425_v17 = vpack.c.b16 %v424_v16, %v424_v16 }
 0x186   : > { %v343_v36 = vmul.f32 1.442695, %v342_v33 }
 0x188   : > { %769 = vpow2.f32 %v343_v36 }
 0x18e   : > { %v770_v38 = vpop.eup %769 }
 0x18f   : > { %v345_v39 = vsel %vm319_vm0, %v770_v38, 0.0 }
 0x190   : > { %346 = vadd.xlane.f32.xlu2 %v345_v39 }
 0x19b   : > { %v391_v40 = vpop.permute.xlu1 %390 }
 0x19c   : > { %v396_v41 = vsel %vm319_vm0, %v391_v40, 0 }
 0x19d   : > { %405 = vmatpush.bf16.xpose.msra.mxu2 %v396_v41 }
 0x1a3   : > { %v461_v57 = vpop.permute.xlu1 %460 }
 0x1a4   : > { %719 = vmatmul.msk.bf16.vlgmr.msra.gmra.mxu2 %vm319_vm0, %v386_v44 }
 0x1a8   : > { %540 = vrot.lane.b32.xlu2 %v539_v45, %s818_s26 }
 0x203   : > { %v347_v50 = vpop.xlane.xlu2 %346 }
 0x204   : > { %771 = vrcp.f32 %v347_v50 }
 0x20a   : > { %v772_v51 = vpop.eup %771 }
 0x20b   : > { %v541_v52 = vpop.permute.xlu2 %540  ;;  %v349_v53 = vmul.f32 %v772_v51, %v770_v38  ;;  %v500_v38 = vpack.c.b16 %v499_v37, %v499_v37 }
 0x20c   : > { %v546_v54 = vsel %vm319_vm0, %v541_v52, 0 }
 0x20d   : > { %555 = vmatpush.bf16.xpose.msrb.mxu0 %v546_v54  ;;  %v350_v55 = vpack.c.bf16 %v349_v53, %v349_v53 }
 0x20f   : > { %718 = vmatmul.msk.bf16.vlgmr.msra.gmra.mxu1 %vm319_vm0, %v350_v55 }
 0x214   : > { %723 = vmatmul.msk.bf16.vlgmr.msrb.gmra.mxu0 %vm319_vm0, %v536_v56 }
 0x21f   : > { %721 = vmatmul.msk.bf16.vlgmr.msrb.gmra.mxu1 %vm319_vm0, %v461_v57 }
 0x227   : > { %v407_v58 = vpop.f32.mrf.mxu2 }
 0x228   : > { %v408_v59 = vadd.f32 %v407_v58, %v898_v13 }
 0x22a   : > { %v411_v60 = vsel %vm319_vm0, %v408_v59, -inf }
 0x22b   : > { %412 = vmax.xlane.f32.xlu2 %v411_v60 }
 0x22f   : > { %v409_v61 = vpop.f32.mrf.mxu2 }
 0x28c   : > { %v372_v62 = vpop.f32.mrf.mxu1 }
 0x28d   : > { %v376_v63 = vpack.c.bf16 %v372_v62, %v372_v62 }
 0x28f   : > { %378 = vst.msk [vmem:[%s929_s28] sm:$0xf] %vm377_vm3, %v376_v63 }
 0x291   : > { %v557_v0 = vpop.f32.mrf.mxu0 }
 0x292   : > { %v558_v1 = vadd.f32 %v557_v0, %v898_v13 }
 0x294   : > { %v374_v2 = vpop.f32.mrf.mxu1  ;;  %v561_v3 = vsel %vm319_vm0, %v558_v1, -inf }
 0x295   : > { %562 = vmax.xlane.f32.xlu0 %v561_v3 }
 0x299   : > { %v559_v4 = vpop.f32.mrf.mxu0 }
 0x29c   : > { %v482_v5 = vpop.f32.mrf.mxu1 }
 0x29d   : > { %v483_v6 = vadd.f32 %v482_v5, %v898_v13 }
 0x29e   : > { %v413_v7 = vpop.xlane.xlu2 %412 }
 0x29f   : > { %v414_v8 = vsub.f32 %v408_v59, %v413_v7  ;;  %v486_v9 = vsel %vm319_vm0, %v483_v6, -inf }
 0x2a0   : > { %487 = vmax.xlane.f32.xlu1 %v486_v9 }
 0x2a1   : > { %v415_v10 = vmul.f32 1.442695, %v414_v8 }
 0x2a3   : > { %773 = vpow2.f32 %v415_v10 }
 0x2a4   : > { %v484_v11 = vpop.f32.mrf.mxu1 }
 0x2a9   : > { %v774_v12 = vpop.eup %773 }
 0x2aa   : > { %v417_v14 = vsel %vm319_vm0, %v774_v12, 0.0 }
 0x2ab   : > { %418 = vadd.xlane.f32.xlu2 %v417_v14 }
 0x2b9   : > { %426 = vrot.lane.b32.xlu1 %v425_v17, %s819_s22 }
 0x308   : > { %v563_v18 = vpop.xlane.xlu0 %562 }
 0x309   : > { %v564_v13 = vsub.f32 %v558_v1, %v563_v18 }
 0x30b   : > { %v565_v19 = vmul.f32 1.442695, %v564_v13 }
 0x30d   : > { %775 = vpow2.f32 %v565_v19 }
 0x313   : > { %v776_v20 = vpop.eup %775  ;;  %v488_v21 = vpop.xlane.xlu1 %487 }
 0x314   : > { %v489_v22 = vsub.f32 %v483_v6, %v488_v21  ;;  %v567_v23 = vsel %vm319_vm0, %v776_v20, 0.0 }
 0x315   : > { %568 = vadd.xlane.f32.xlu0 %v567_v23 }
 0x316   : > { %v490_v24 = vmul.f32 1.442695, %v489_v22 }
 0x318   : > { %777 = vpow2.f32 %v490_v24 }
 0x31e   : > { %v778_v25 = vpop.eup %777  ;;  %v419_v26 = vpop.xlane.xlu2 %418 }
 0x31f   : > { %v492_v28 = vsel %vm319_vm0, %v778_v25, 0.0  ;;  %779 = vrcp.f32 %v419_v26 }
 0x320   : > { %493 = vadd.xlane.f32.xlu2 %v492_v28 }
 0x325   : > { %v780_v31 = vpop.eup %779 }
 0x326   : > { %v421_v32 = vmul.f32 %v780_v31, %v774_v12 }
 0x328   : > { %v422_v36 = vpack.c.bf16 %v421_v32, %v421_v32 }
 0x329   : > { %576 = vrot.lane.b32.xlu0 %v575_v30, %s820_s29 }
 0x32b   : > { %v427_v33 = vpop.permute.xlu1 %426 }
 0x32c   : > { %v432_v34 = vsel %vm359_vm2, %v427_v33, 0 }
 0x32d   : > { %441 = vmatpush.bf16.msra.mxu3 %v432_v34 }
 0x330   : > { %720 = vmatmul.msk.bf16.vlgmr.msra.gmra.mxu3 %vm319_vm0, %v422_v36 }
 0x338   : > { %501 = vrot.lane.b32.xlu2 %v500_v38, %s821_s30 }
 0x388   : > { %v569_v39 = vpop.xlane.xlu0 %568 }
 0x389   : > { %781 = vrcp.f32 %v569_v39 }
 0x38f   : > { %v782_v41 = vpop.eup %781 }
 0x390   : > { %v571_v43 = vmul.f32 %v782_v41, %v776_v20 }
 0x392   : > { %v572_v50 = vpack.c.bf16 %v571_v43, %v571_v43 }
 0x393   : > { %v494_v40 = vpop.xlane.xlu2 %493 }
 0x394   : > { %783 = vrcp.f32 %v494_v40 }
 0x39a   : > { %v784_v42 = vpop.eup %783 }
 0x39b   : > { %v496_v44 = vmul.f32 %v784_v42, %v778_v25  ;;  %v577_v45 = vpop.permute.xlu0 %576  ;;  %v502_v46 = vpop.permute.xlu2 %501 }
 0x39c   : > { %v507_v47 = vsel %vm359_vm2, %v502_v46, 0  ;;  %v582_v48 = vsel %vm359_vm2, %v577_v45, 0 }
 0x39d   : > { %516 = vmatpush.bf16.msrb.mxu3 %v507_v47  ;;  %591 = vmatpush.bf16.msrb.mxu2 %v582_v48  ;;  %v497_v49 = vpack.c.bf16 %v496_v44, %v496_v44 }
 0x3a0   : > { %722 = vmatmul.msk.bf16.vlgmr.msrb.gmra.mxu3 %vm319_vm0, %v497_v49  ;;  %724 = vmatmul.msk.bf16.vlgmr.msrb.gmra.mxu2 %vm319_vm0, %v572_v50 }
 0x3b3   : > { %v443_v51 = vpop.f32.mrf.mxu3 }
 0x3b4   : > { %v447_v52 = vpack.c.bf16 %v443_v51, %v443_v51 }
 0x3b6   : > { %449 = vrot.lane.b32.xlu1 %v447_v52, %s822_s6 }
 0x3bb   : > { %v445_v53 = vpop.f32.mrf.mxu3 }
 0x423   : > { %v518_v54 = vpop.f32.mrf.mxu3  ;;  %v593_v55 = vpop.f32.mrf.mxu2 }
 0x424   : > { %v522_v56 = vpack.c.bf16 %v518_v54, %v518_v54  ;;  %v597_v57 = vpack.c.bf16 %v593_v55, %v593_v55 }
 0x426   : > { %599 = vrot.lane.b32.xlu0 %v597_v57, %s823_s7  ;;  %524 = vrot.lane.b32.xlu1 %v522_v56, %s824_s8 }
 0x428   : > { %v450_v58 = vpop.permute.xlu1 %449 }
 0x429   : > { %453 = vst.msk [vmem:[%s929_s28] sm:$0xf] %vm452_vm4, %v450_v58 }
 0x42b   : > { %v520_v59 = vpop.f32.mrf.mxu3  ;;  %v595_v60 = vpop.f32.mrf.mxu2 }
 0x498   : > { %v600_v61 = vpop.permute.xlu0 %599  ;;  %v525_v62 = vpop.permute.xlu1 %524 }
 0x499   : > { %528 = vst.msk [vmem:[%s929_s28] sm:$0xf] %vm527_vm5, %v525_v62 }
 0x49a   : > { %603 = vst.msk [vmem:[%s929_s28] sm:$0xf] %vm602_vm6, %v600_v61 }
 0x49b PF: > { %s15_s20 = sadd.s32 1, %s807_s20   ;;  %s966_s18 = smov %s803_s19 }
 0x49c   : > { %p12_p5 = scmp.ge.s32.totalorder %s15_s20, 4   ;;  %s967_s19 = smov %s969_s21 }
 0x49e   :  { %14 = sbr.rel (!%p12_p5) target bundleno = 2 (0x2), region = 82 }

// kernel: individual_token_refiner.12
= control target key start
LH: loop header
LB: loop body
LE: loop exit
PB: predicated region body
PF: predicated region fallthrough
CT: control target
= control target key end

     0   :  { %vm25_vm0 = vcmask 261120   ;;  %v122_v1 = vmov 0.0   ;;  %s190_s1 = inlined_call_operand.vmem [shape: bf16[32,32], index: 1, kind: input, shape index: {}]   ;;  %s191_s2 = inlined_call_operand.vmem [shape: f32[1,32], index: 2, kind: input, shape index: {}]   ;;  %s192_s4 = inlined_call_operand.vmem [shape: f32[2,32], index: 4, kind: input, shape index: {}]   ;;  %s193_s0 = inlined_call_operand.vmem [shape: bf16[16,32], index: 0, kind: input, shape index: {}]   ;;  %s194_s3 = inlined_call_operand.vmem [shape: f32[16,32], index: 3, kind: input, shape index: {}, may-alias: {3,5}]   ;;  %s195_s5 = inlined_call_operand.vmem [shape: f32[16,32], index: 5, kind: output, shape index: {}, may-alias: {3,5}]  }
   0x1   :  { %v117_v0 = vld [vmem:[%s190_s1 + $0x8] sm:$0xff]  ;;  %26 = vst.msk [vmem:[#allocation2] sm:$0xff] %vm25_vm0, %v122_v1  ;;  %v116_v2 = vld [vmem:[%s190_s1] sm:$0xff] }
   0x2   :  { %27 = vst.msk [vmem:[#allocation2 + $0x8] sm:$0xff] %vm25_vm0, %v122_v1  ;;  %63 = vmatpush.bf16.msra.mxu0 %v117_v0  ;;  %v115_v3 = vld [vmem:[%s193_s0] sm:$0xff] }
   0x3   :  { %v119_v8 = vld [vmem:[%s191_s2] ss:$0 sm:$0xff]  ;;  %v121_v17 = vld [vmem:[%s192_s4 + $0x1] ss:$0 sm:$0xff] }
   0x4   :  { %v120_v10 = vld [vmem:[%s192_s4] ss:$0 sm:$0xff] }
   0x5   :  { %v86_v14 = vld [vmem:[%s194_s3] sm:$0xff] }
   0x6   :  { %64 = vmatpush.bf16.msra.mxu0 %v116_v2 }
   0x8   :  { %v30_v4 = vld [vmem:[#allocation2] sm:$0xff] }
   0x9   :  { %114 = vmatmul.msk.bf16.vlgmr.msra.gmra.mxu0 %vm25_vm0, %v115_v3  ;;  %v31_v7 = vld [vmem:[#allocation2 + $0x8] sm:$0xff] }
  0x86   :  { %v66_v5 = vpop.f32.mrf.mxu0 }
  0x87   :  { %v71_v6 = vadd.f32 %v66_v5, %v30_v4 }
  0x89   :  { %73 = vst.msk [vmem:[#allocation2] sm:$0xff] %vm25_vm0, %v71_v6 }
  0x8e   :  { %v68_v9 = vpop.f32.mrf.mxu0 }
  0x8f   :  { %v72_v11 = vadd.f32 %v68_v9, %v31_v7 }
  0x90   :  { %v78_v12 = vld [vmem:[#allocation2] sm:$0xff] }
  0x91   :  { %v84_v13 = vadd.f32 %v119_v8, %v78_v12  ;;  %74 = vst.msk [vmem:[#allocation2 + $0x8] sm:$0xff] %vm25_vm0, %v72_v11 }
  0x93   :  { %v89_v15 = vmul.f32 %v120_v10, %v84_v13 }
  0x95   :  { %v90_v16 = vadd.f32 %v89_v15, %v86_v14 }
  0x97   :  { %91 = vst.msk [vmem:[%s195_s5] sm:$0xff] %vm25_vm0, %v90_v16 }
  0x98   :  { %v79_v18 = vld [vmem:[#allocation2 + $0x8] sm:$0xff] }
  0x99   :  { %v85_v19 = vadd.f32 %v119_v8, %v79_v18 }
  0x9b   :  { %v95_v21 = vmul.f32 %v121_v17, %v85_v19 }
  0x9e   :  { %v92_v20 = vld [vmem:[%s194_s3 + $0x8] sm:$0xff] }
  0x9f   :  { %v96_v22 = vadd.f32 %v95_v21, %v92_v20 }
  0xa1   :  { %97 = vst.msk [vmem:[%s195_s5 + $0x8] sm:$0xff] %vm25_vm0, %v96_v22 }

// kernel: individual_token_refiner.13
= control target key start
LH: loop header
LB: loop body
LE: loop exit
PB: predicated region body
PF: predicated region fallthrough
CT: control target
= control target key end

     0   :  { %vm29_vm0 = vcmask 261120   ;;  %v230_v4 = vmov 32.0   ;;  %vm93_vm6 = vcmask 257024   ;;  %s290_s0 = inlined_call_operand.vmem [shape: f32[16,32], index: 0, kind: input, shape index: {}]   ;;  %s291_s1 = inlined_call_operand.vmem [shape: f32[1,32], index: 1, kind: input, shape index: {}]   ;;  %s292_s2 = inlined_call_operand.vmem [shape: f32[1,32], index: 2, kind: input, shape index: {}]   ;;  %s293_s4 = inlined_call_operand.vmem [shape: f32[1,128], index: 4, kind: input, shape index: {}]   ;;  %s294_s3 = inlined_call_operand.vmem [shape: bf16[32,128], index: 3, kind: input, shape index: {}]   ;;  %s295_s5 = inlined_call_operand.vmem [shape: bf16[16,128], index: 5, kind: output, shape index: {}]  }
   0x1   :  { %v25_v0 = vld [vmem:[%s290_s0] sm:$0xff]  ;;  %v26_v2 = vld [vmem:[%s290_s0 + $0x8] sm:$0xff]  ;;  %216 = vrcp.f32 %v230_v4 }
   0x2   :  { %v30_v1 = vsel %vm29_vm0, %v25_v0, 0.0  ;;  %v33_v3 = vsel %vm29_vm0, %v26_v2, 0.0  ;;  %v206_v24 = vld [vmem:[%s294_s3 + $0x8] sm:$0xff]  ;;  %v205_v27 = vld [vmem:[%s294_s3] sm:$0xff] }
   0x3   :  { %31 = vadd.xlane.f32.xlu0 %v30_v1  ;;  %133 = vmatpush.bf16.msra.mxu0 %v206_v24  ;;  %v213_v37 = vld [vmem:[%s291_s1] ss:$0 sm:$0xff] }
   0x4   :  { %v214_v40 = vld [vmem:[%s292_s2] ss:$0 sm:$0xff] }
   0x5   :  { %v215_v54 = vld [vmem:[%s293_s4] ss:$0 sm:$0xff] }
   0x7   :  { %v217_v5 = vpop.eup %216  ;;  %134 = vmatpush.bf16.msra.mxu0 %v205_v27 }
   0x8   :  { %v37_v6 = vmul.f32 32.0, %v217_v5  ;;  %vm41_vm1 = vweird.f32 %v217_v5 }
   0xa   :  { %v38_v7 = vsub.f32 1.0, %v37_v6 }
   0xb   :  { %34 = vadd.xlane.f32.xlu0 %v33_v3 }
   0xc   :  { %v39_v8 = vmul.f32 %v217_v5, %v38_v7 }
   0xe   :  { %v40_v9 = vadd.f32 %v217_v5, %v39_v8 }
  0x10   :  { %v42_v10 = vsel %vm41_vm1, %v217_v5, %v40_v9 }
  0x76   :  { %v32_v11 = vpop.xlane.xlu0 %31 }
  0x77   :  { %v43_v12 = vmul.f32 %v42_v10, %v32_v11 }
  0x79   :  { %v45_v13 = vsub.f32 %v25_v0, %v43_v12 }
  0x7b   :  { %v47_v14 = vmul.f32 %v45_v13, %v45_v13 }
  0x7d   :  { %v49_v15 = vsel %vm29_vm0, %v47_v14, 0.0 }
  0x7e   :  { %50 = vadd.xlane.f32.xlu1 %v49_v15  ;;  %v35_v16 = vpop.xlane.xlu0 %34 }
  0x7f   :  { %v44_v17 = vmul.f32 %v42_v10, %v35_v16 }
  0x81   :  { %v46_v18 = vsub.f32 %v26_v2, %v44_v17 }
  0x83   :  { %v48_v19 = vmul.f32 %v46_v18, %v46_v18 }
  0x85   :  { %v52_v20 = vsel %vm29_vm0, %v48_v19, 0.0 }
  0x86   :  { %53 = vadd.xlane.f32.xlu1 %v52_v20 }
  0xf1   :  { %v51_v21 = vpop.xlane.xlu1 %50 }
  0xf2   :  { %v55_v22 = vmul.f32 %v51_v21, %v42_v10 }
  0xf4   :  { %v57_v23 = vadd.f32 1e-06, %v55_v22 }
  0xf6   :  { %218 = vrsqrt.f32 %v57_v23  ;;  %vm65_vm3 = vweird.f32 %v57_v23 }
  0xf9   :  { %v54_v25 = vpop.xlane.xlu1 %53 }
  0xfa   :  { %v56_v26 = vmul.f32 %v54_v25, %v42_v10 }
  0xfc   :  { %v219_v28 = vpop.eup %218  ;;  %v58_v29 = vadd.f32 1e-06, %v56_v26 }
  0xfd   :  { %v60_v30 = vmul.f32 %v219_v28, %v57_v23  ;;  %vm66_vm2 = vweird.f32 %v219_v28 }
  0xfe   :  { %220 = vrsqrt.f32 %v58_v29  ;;  %vm67_vm4 = vmor %vm65_vm3, %vm66_vm2  ;;  %vm75_vm7 = vweird.f32 %v58_v29 }
  0xff   :  { %v61_v31 = vmul.f32 %v219_v28, %v60_v30 }
 0x101   :  { %v62_v32 = vmul.f32 0.5, %v61_v31 }
 0x103   :  { %v63_v33 = vsub.f32 1.5, %v62_v32 }
 0x104   :  { %v221_v34 = vpop.eup %220 }
 0x105   :  { %v64_v35 = vmul.f32 %v219_v28, %v63_v33  ;;  %v70_v36 = vmul.f32 %v221_v34, %v58_v29  ;;  %vm76_vm5 = vweird.f32 %v221_v34 }
 0x106   :  { %vm77_vm8 = vmor %vm75_vm7, %vm76_vm5 }
 0x107   :  { %v68_v38 = vsel %vm67_vm4, %v219_v28, %v64_v35  ;;  %v71_v39 = vmul.f32 %v221_v34, %v70_v36 }
 0x108   :  { %v79_v41 = vmul.f32 %v68_v38, %v45_v13 }
 0x109   :  { %v72_v42 = vmul.f32 0.5, %v71_v39 }
 0x10a   :  { %v84_v43 = vmul.f32 %v213_v37, %v79_v41 }
 0x10b   :  { %v73_v44 = vsub.f32 1.5, %v72_v42 }
 0x10c   :  { %v89_v45 = vadd.f32 %v214_v40, %v84_v43 }
 0x10d   :  { %v74_v46 = vmul.f32 %v221_v34, %v73_v44 }
 0x10e   :  { %v91_v47 = vpack.c.bf16 %v89_v45, %v89_v45 }
 0x10f   :  { %v78_v48 = vsel %vm77_vm8, %v221_v34, %v74_v46 }
 0x110   :  { %94 = vst.msk [vmem:[#allocation2] sm:$0xf] %vm93_vm6, %v91_v47  ;;  %v80_v49 = vmul.f32 %v78_v48, %v46_v18 }
 0x112   :  { %v85_v50 = vmul.f32 %v213_v37, %v80_v49 }
 0x114   :  { %v90_v51 = vadd.f32 %v214_v40, %v85_v50 }
 0x116   :  { %v92_v52 = vpack.c.bf16 %v90_v51, %v90_v51 }
 0x118   :  { %95 = vst.msk [vmem:[#allocation2 + $0x4] sm:$0xf] %vm93_vm6, %v92_v52 }
 0x11f   :  { %v204_v53 = vld [vmem:[#allocation2] sm:$0xff] }
 0x120   :  { %201 = vmatmul.msk.bf16.vlgmr.msra.gmra.mxu0 %vm29_vm0, %v204_v53 }
 0x19d   :  { %v136_v55 = vpop.f32.mrf.mxu0 }
 0x19e   :  { %v137_v56 = vadd.f32 %v215_v54, %v136_v55 }
 0x1a0   :  { %v202_v57 = vmul.f32 -1.442695, %v137_v56 }
 0x1a2   :  { %222 = vpow2.f32 %v202_v57 }
 0x1a5   :  { %v138_v58 = vpop.f32.mrf.mxu0 }
 0x1a6   :  { %v139_v59 = vadd.f32 %v215_v54, %v138_v58 }
 0x1a8   :  { %v223_v60 = vpop.eup %222  ;;  %v203_v61 = vmul.f32 -1.442695, %v139_v59 }
 0x1a9   :  { %v147_v62 = vadd.f32 1.0, %v223_v60 }
 0x1aa   :  { %224 = vpow2.f32 %v203_v61 }
 0x1ab   :  { %226 = vrcp.f32 %v147_v62  ;;  %v160_v8 = vand.u32 2147483648, %v147_v62  ;;  %vm154_vm10 = vweird.f32 %v147_v62  ;;  %v158_v9 = vand.u32 2147483647, %v147_v62 }
 0x1ad   :  { %v161_v15 = vor.u32 1.1754944e-38, %v160_v8  ;;  %vm159_vm13 = vcmp.eq.f32.partialorder %v158_v9, 8.507059e+37 }
 0x1b0   :  { %v225_v63 = vpop.eup %224 }
 0x1b1   :  { %v227_v0 = vpop.eup %226  ;;  %v148_v1 = vadd.f32 1.0, %v225_v63 }
 0x1b2   :  { %v150_v2 = vmul.f32 %v227_v0, %v147_v62  ;;  %vm155_vm9 = vweird.f32 %v227_v0 }
 0x1b3   :  { %228 = vrcp.f32 %v148_v1  ;;  %vm156_vm11 = vmor %vm154_vm10, %vm155_vm9  ;;  %v175_v11 = vand.u32 2147483648, %v148_v1  ;;  %v173_v14 = vand.u32 2147483647, %v148_v1  ;;  %vm169_vm14 = vweird.f32 %v148_v1 }
 0x1b4   :  { %v151_v3 = vsub.f32 1.0, %v150_v2 }
 0x1b5   :  { %v176_v18 = vor.u32 1.1754944e-38, %v175_v11  ;;  %vm174_vm0 = vcmp.eq.f32.partialorder %v173_v14, 8.507059e+37 }
 0x1b6   :  { %v152_v4 = vmul.f32 %v227_v0, %v151_v3 }
 0x1b8   :  { %v153_v6 = vadd.f32 %v227_v0, %v152_v4 }
 0x1b9   :  { %v229_v5 = vpop.eup %228 }
 0x1ba   :  { %v165_v7 = vmul.f32 %v229_v5, %v148_v1  ;;  %v157_v12 = vsel %vm156_vm11, %v227_v0, %v153_v6  ;;  %vm170_vm12 = vweird.f32 %v229_v5 }
 0x1bb   :  { %v162_v17 = vsel %vm159_vm13, %v161_v15, %v157_v12  ;;  %vm171_vm15 = vmor %vm169_vm14, %vm170_vm12 }
 0x1bc   :  { %v166_v10 = vsub.f32 1.0, %v165_v7  ;;  %v179_v21 = vmul.f32 %v162_v17, %v137_v56 }
 0x1be   :  { %v167_v13 = vmul.f32 %v229_v5, %v166_v10 }
 0x1c0   :  { %v168_v16 = vadd.f32 %v229_v5, %v167_v13 }
 0x1c2   :  { %v172_v19 = vsel %vm171_vm15, %v229_v5, %v168_v16 }
 0x1c3   :  { %v177_v20 = vsel %vm174_vm0, %v176_v18, %v172_v19 }
 0x1c4   :  { %v180_v22 = vmul.f32 %v177_v20, %v139_v59 }
 0x1c6   :  { %v210_v23 = vpack.c.bf16 %v180_v22, %v179_v21 }
 0x1c8   :  { %211 = vst [vmem:[%s295_s5] sm:$0xff] %v210_v23  }

// kernel: individual_token_refiner.14
= control target key start
LH: loop header
LB: loop body
LE: loop exit
PB: predicated region body
PF: predicated region fallthrough
CT: control target
= control target key end

     0   :  { %vm24_vm0 = vcmask 261120   ;;  %v196_v2 = vmov 0.0   ;;  %s281_s1 = inlined_call_operand.vmem [shape: bf16[128,32], index: 1, kind: input, shape index: {}]   ;;  %s282_s2 = inlined_call_operand.vmem [shape: f32[1,32], index: 2, kind: input, shape index: {}]   ;;  %s283_s4 = inlined_call_operand.vmem [shape: f32[2,32], index: 4, kind: input, shape index: {}]   ;;  %s284_s0 = inlined_call_operand.vmem [shape: bf16[16,128], index: 0, kind: input, shape index: {}]   ;;  %s285_s3 = inlined_call_operand.vmem [shape: f32[16,32], index: 3, kind: input, shape index: {}, may-alias: {3,5}]   ;;  %s286_s5 = inlined_call_operand.vmem [shape: f32[16,32], index: 5, kind: output, shape index: {}, may-alias: {3,5}]  }
   0x1   :  { %v191_v0 = vld [vmem:[%s281_s1 + $0x38] sm:$0xff]  ;;  %v190_v1 = vld [vmem:[%s281_s1 + $0x30] sm:$0xff]  ;;  %25 = vst.msk [vmem:[#allocation2] sm:$0xff] %vm24_vm0, %v196_v2  ;;  %v189_v3 = vld [vmem:[%s281_s1 + $0x28] sm:$0xff] }
   0x2   :  { %101 = vmatpush.bf16.msra.mxu0 %v191_v0  ;;  %26 = vst.msk [vmem:[#allocation2 + $0x8] sm:$0xff] %vm24_vm0, %v196_v2  ;;  %v188_v4 = vld [vmem:[%s281_s1 + $0x20] sm:$0xff]  ;;  %v187_v5 = vld [vmem:[%s281_s1 + $0x18] sm:$0xff]  ;;  %v186_v6 = vld [vmem:[%s281_s1 + $0x10] sm:$0xff] }
   0x3   :  { %v185_v7 = vld [vmem:[%s281_s1 + $0x8] sm:$0xff]  ;;  %v184_v8 = vld [vmem:[%s281_s1] sm:$0xff] }
   0x4   :  { %v183_v9 = vld [vmem:[%s284_s0] sm:$0xff] }
   0x5   :  { %v193_v14 = vld [vmem:[%s282_s2] ss:$0 sm:$0xff]  ;;  %v195_v23 = vld [vmem:[%s283_s4 + $0x1] ss:$0 sm:$0xff] }
   0x6   :  { %102 = vmatpush.bf16.msra.mxu0 %v190_v1  ;;  %v194_v16 = vld [vmem:[%s283_s4] ss:$0 sm:$0xff] }
   0x7   :  { %v131_v20 = vld [vmem:[%s285_s3] sm:$0xff] }
   0x8   :  { %v29_v10 = vld [vmem:[#allocation2] sm:$0xff] }
   0x9   :  { %v30_v13 = vld [vmem:[#allocation2 + $0x8] sm:$0xff] }
   0xa   :  { %103 = vmatpush.bf16.msra.mxu0 %v189_v3 }
   0xe   :  { %104 = vmatpush.bf16.msra.mxu0 %v188_v4 }
  0x12   :  { %105 = vmatpush.bf16.msra.mxu0 %v187_v5 }
  0x16   :  { %106 = vmatpush.bf16.msra.mxu0 %v186_v6 }
  0x1a   :  { %107 = vmatpush.bf16.msra.mxu0 %v185_v7 }
  0x1e   :  { %108 = vmatpush.bf16.msra.mxu0 %v184_v8 }
  0x21   :  { %109 = vmatmul.bf16.vlgmr.msra.gmra.mxu0 %v183_v9 }
  0x9e   :  { %v110_v11 = vpop.f32.mrf.mxu0 }
  0x9f   :  { %v115_v12 = vadd.f32 %v110_v11, %v29_v10 }
  0xa1   :  { %118 = vst.msk [vmem:[#allocation2] sm:$0xff] %vm24_vm0, %v115_v12 }
  0xa6   :  { %v112_v15 = vpop.f32.mrf.mxu0 }
  0xa7   :  { %v116_v17 = vadd.f32 %v112_v15, %v30_v13 }
  0xa8   :  { %v123_v18 = vld [vmem:[#allocation2] sm:$0xff] }
  0xa9   :  { %v129_v19 = vadd.f32 %v193_v14, %v123_v18  ;;  %119 = vst.msk [vmem:[#allocation2 + $0x8] sm:$0xff] %vm24_vm0, %v116_v17 }
  0xab   :  { %v134_v21 = vmul.f32 %v194_v16, %v129_v19 }
  0xad   :  { %v135_v22 = vadd.f32 %v134_v21, %v131_v20 }
  0xaf   :  { %136 = vst.msk [vmem:[%s286_s5] sm:$0xff] %vm24_vm0, %v135_v22 }
  0xb0   :  { %v124_v24 = vld [vmem:[#allocation2 + $0x8] sm:$0xff] }
  0xb1   :  { %v130_v25 = vadd.f32 %v193_v14, %v124_v24 }
  0xb3   :  { %v140_v27 = vmul.f32 %v195_v23, %v130_v25 }
  0xb6   :  { %v137_v26 = vld [vmem:[%s285_s3 + $0x8] sm:$0xff] }
  0xb7   :  { %v141_v28 = vadd.f32 %v140_v27, %v137_v26 }
  0xb9   :  { %142 = vst.msk [vmem:[%s286_s5 + $0x8] sm:$0xff] %vm24_vm0, %v141_v28 }

</bundles_post_ra>
